<compile_context>
chip_gen: v6e
topology: v6e:2x2x1
jax: 0.10.0
libtpu: 0.0.40
codegen_flags: <defaults>
</compile_context>

<pallas_src>
import functools

import numpy as np
import jax
import jax.numpy as jnp
from jax.experimental import pallas as pl
from jax.experimental.pallas import tpu as pltpu

NEG_SLOPE = 0.01
BN_EPS = 1e-5


# ---------------------------------------------------------------------------
# Fused Pallas kernel (one grid step == one batch element)
# ---------------------------------------------------------------------------
def _lrelu(z):
    return jnp.where(z >= 0.0, z, NEG_SLOPE * z)


def _make_fused_kernel(metas, head_rows):
    """metas: tuple of (kernel_size, stride, out_h) per conv layer (static)."""

    def kernel(*refs):
        o_ref = refs[-1]
        a = refs[0][0]                      # (H, W*Cin) f32, one batch element
        idx = 1

        for (k, s, oh) in metas:
            if s > 1:
                r_ref = refs[idx]
                idx += 1
            else:
                r_ref = None
            v_ref, sh_ref = refs[idx], refs[idx + 1]
            idx += 2

            acc = None
            for kh in range(k):             # static unrolled loop (<= 7)
                if r_ref is not None:
                    # 0/1 row-selection matmul: picks input rows s*oh + kh.
                    rows = jnp.dot(r_ref[kh], a,
                                   preferred_element_type=jnp.float32)
                else:                       # stride 1 -> contiguous static slice
                    rows = a[kh:kh + oh, :]
                # conv weights + BN scale folded into the block-Toeplitz V_kh.
                part = jnp.dot(rows.astype(jnp.bfloat16), v_ref[kh],
                               preferred_element_type=jnp.float32)
                acc = part if acc is None else acc + part
            a = _lrelu(acc + sh_ref[...])   # (OH, OW*Cout) f32, stays on-chip

        # value head: Linear(conv_out, 64) -> LeakyReLU -> Linear(64,1) -> Sigmoid
        w1_ref, b1_ref, w2_ref, b2_ref = refs[idx:idx + 4]
        h = None
        for r in range(head_rows):          # head_rows == final OH (1 here)
            part = jnp.dot(a[r:r + 1, :].astype(jnp.bfloat16), w1_ref[r],
                           preferred_element_type=jnp.float32)
            h = part if h is None else h + part
        h = _lrelu(h + b1_ref[...])                                    # (1, 64)
        y = jnp.sum(h * w2_ref[...], axis=-1, keepdims=True) + b2_ref[...]
        e = jnp.exp(-jnp.abs(y))                                       # safe sigmoid
        o_ref[0] = jnp.where(y >= 0.0, 1.0 / (1.0 + e), e / (1.0 + e))

    return kernel


def _full_spec(arr):
    nd = arr.ndim
    return pl.BlockSpec(arr.shape, lambda b, _nd=nd: (0,) * _nd)


def conv_reward_net_forward(params, x_nchw):
    n, c, hh, ww = x_nchw.shape
    # uint8 -> f32 and NCHW -> (N, H, W*C).  The /256 is folded into the
    # layer-1 weights, so no scaling pass over the input is needed.
    x = jnp.transpose(x_nchw.astype(jnp.float32), (0, 2, 3, 1)).reshape(n, hh, ww * c)

    args = [x]
    in_specs = [pl.BlockSpec((1, hh, ww * c), lambda b: (b, 0, 0))]
    metas = []
    for layer in params["conv"]:
        metas.append((layer["k"], layer["s"], layer["oh"]))
        if layer["r"] is not None:
            args.append(layer["r"])
            in_specs.append(_full_spec(layer["r"]))
        args.append(layer["v"])
        in_specs.append(_full_spec(layer["v"]))
        args.append(layer["shift"])
        in_specs.append(_full_spec(layer["shift"]))
    for name in ("w1", "b1", "w2", "b2"):
        args.append(params[name])
        in_specs.append(_full_spec(params[name]))

    kernel = _make_fused_kernel(tuple(metas), params["w1"].shape[0])
    out = pl.pallas_call(
        kernel,
        out_shape=jax.ShapeDtypeStruct((n, 1, 1), jnp.float32),
        grid=(n,),
        in_specs=in_specs,
        out_specs=pl.BlockSpec((1, 1, 1), lambda b: (b, 0, 0)),
        compiler_params=pltpu.CompilerParams(dimension_semantics=("parallel",)),
    )(*args)
    return out.reshape(n, 1)


# ---------------------------------------------------------------------------
# Parameter construction (synthetic, deterministic) + folded constants
# ---------------------------------------------------------------------------
def init_params(key, input_shape):
    cin, H, W = input_shape
    conv_specs = [(cin, 16, 7, 3), (16, 16, 5, 2), (16, 16, 3, 1), (16, 16, 3, 1)]
    layers = []
    h, w, c = H, W, cin
    for li, (ci, co, k, s) in enumerate(conv_specs):
        key, k1, k2, k3, k4, k5, k6 = jax.random.split(key, 7)
        wt = 0.1 * jax.random.normal(k1, (k, k, ci, co), jnp.float32)  # (kh,kw,Cin,Cout)
        b = 0.1 * jax.random.normal(k2, (co,), jnp.float32)            # conv bias
        gamma = 1.0 + 0.1 * jax.random.normal(k3, (co,), jnp.float32)  # BN weight
        beta = 0.1 * jax.random.normal(k4, (co,), jnp.float32)         # BN bias
        r_mean = 0.1 * jax.random.normal(k5, (co,), jnp.float32)       # BN running mean
        r_var = 1.0 + 0.1 * jnp.abs(jax.random.normal(k6, (co,), jnp.float32))
        bn_scale = gamma / jnp.sqrt(r_var + BN_EPS)
        shift = beta + (b - r_mean) * bn_scale                         # folded shift
        oh = (h - k) // s + 1
        ow = (w - k) // s + 1

        # Fold BN scale (and x/256 for the first layer) into the weights.
        w_scale = bn_scale / 256.0 if li == 0 else bn_scale
        wt_np = np.asarray(wt, np.float32) * np.asarray(w_scale, np.float32)[None, None, None, :]

        # Block-Toeplitz weight: V[kh, wi*Cin + c, ow*Cout + co] = wt[kh, wi - s*ow, c, co]
        V = np.zeros((k, w * ci, ow * co), np.float32)
        for kw in range(k):
            for owi in range(ow):
                wi = s * owi + kw
                V[:, wi * ci:(wi + 1) * ci, owi * co:(owi + 1) * co] += wt_np[:, kw, :, :]

        R = None
        if s > 1:   # 0/1 strided row-selection matrices (stride-1 layers use slices)
            R = np.zeros((k, oh, h), np.float32)
            for kh in range(k):
                R[kh, np.arange(oh), s * np.arange(oh) + kh] = 1.0

        layers.append(dict(
            k=k, s=s, oh=oh,
            v=jnp.asarray(V, jnp.bfloat16),
            r=None if R is None else jnp.asarray(R, jnp.float32),
            shift=jnp.asarray(np.tile(np.asarray(shift, np.float32), ow)[None, :]),
            # unfolded f32 copies for the plain-JAX reference
            w_mat=wt.reshape(k * k * ci, co),
            bn_scale=bn_scale,
            shift_c=shift,
        ))
        h, w, c = oh, ow, co

    conv_out = c * h * w
    key, k1, k2, k3, k4 = jax.random.split(key, 5)
    # w1 rows are in NHWC-flat order (matches the kernel's (OH, OW*C) layout),
    # so no runtime transpose is needed before the head.
    w1 = 0.1 * jax.random.normal(k1, (conv_out, 64), jnp.float32)
    b1 = 0.1 * jax.random.normal(k2, (64,), jnp.float32)
    w2 = 0.1 * jax.random.normal(k3, (64,), jnp.float32)
    b2 = 0.1 * jax.random.normal(k4, (1,), jnp.float32)
    return dict(
        conv=layers,
        w1=jnp.asarray(w1, jnp.bfloat16).reshape(h, w * c, 64),
        b1=b1.reshape(1, 64),
        w2=w2.reshape(1, 64),
        b2=b2.reshape(1, 1),
        w1_2d=w1,                                   # f32 for the reference
    )


# ---------------------------------------------------------------------------
# Plain-JAX reference (same inference semantics, all f32) for validation
# ---------------------------------------------------------------------------
def _reference_forward(params, x_nchw):
    fx = x_nchw.astype(jnp.float32) / 256.0
    fx = jnp.transpose(fx, (0, 2, 3, 1))                    # NCHW -> NHWC
    for layer in params["conv"]:
        k, s = layer["k"], layer["s"]
        N, H, W, C = fx.shape
        oh = (H - k) // s + 1
        ow = (W - k) // s + 1
        cols = []
        for i in range(k):
            for j in range(k):
                cols.append(fx[:, i:i + s * oh:s, j:j + s * ow:s, :])
        p = jnp.stack(cols, axis=3).reshape(N * oh * ow, k * k * C)
        y = p @ layer["w_mat"]
        y = y * layer["bn_scale"][None, :] + layer["shift_c"][None, :]
        y = jnp.where(y >= 0.0, y, NEG_SLOPE * y)
        fx = y.reshape(N, oh, ow, -1)
    flat = fx.reshape(fx.shape[0], -1)                      # NHWC flatten (w1 row order)
    h = flat @ params["w1_2d"] + params["b1"]
    h = jnp.where(h >= 0.0, h, NEG_SLOPE * h)
    y = h @ params["w2"].T + params["b2"]
    return 1.0 / (1.0 + jnp.exp(-y))


# ---------------------------------------------------------------------------
if __name__ == "__main__":
    # The 4 conv layers (k7s3, k5s2, k3s1, k3s1) need spatial >= 43; use 48.
    input_shape = (4, 48, 48)   # (C, H, W)
    batch = 2

    key = jax.random.PRNGKey(0)
    kp, kx = jax.random.split(key)
    params = init_params(kp, input_shape)

    # uint8-like pixel frames, as the /256 scaling in forward() implies.
    x = jax.random.randint(kx, (batch,) + input_shape, 0, 256, dtype=jnp.int32)
    x = x.astype(jnp.uint8)

    fwd = jax.jit(functools.partial(conv_reward_net_forward, params))
    out = jax.block_until_ready(fwd(x))

    assert out.shape == (batch, 1) and out.dtype == jnp.float32
    assert bool(jnp.all((out >= 0.0) & (out <= 1.0)))       # sigmoid range

    ref = jax.block_until_ready(_reference_forward(params, x))
    max_err = float(jnp.max(jnp.abs(out - ref)))
    assert max_err < 5e-2, f"kernel/reference mismatch: max abs err = {max_err}"

    print("KERNEL_OK")
</pallas_src>

<mosaic_0001>
module attributes {stable_mosaic.version = 11 : i64} {
  func.func @kernel(%arg0: i32, %arg1: memref<1x48x192xf32, #tpu.memory_space<vmem>>, %arg2: memref<7x14x48xf32, #tpu.memory_space<vmem>>, %arg3: memref<7x192x224xbf16, #tpu.memory_space<vmem>>, %arg4: memref<1x224xf32, #tpu.memory_space<vmem>>, %arg5: memref<5x5x14xf32, #tpu.memory_space<vmem>>, %arg6: memref<5x224x80xbf16, #tpu.memory_space<vmem>>, %arg7: memref<1x80xf32, #tpu.memory_space<vmem>>, %arg8: memref<3x80x48xbf16, #tpu.memory_space<vmem>>, %arg9: memref<1x48xf32, #tpu.memory_space<vmem>>, %arg10: memref<3x48x16xbf16, #tpu.memory_space<vmem>>, %arg11: memref<1x16xf32, #tpu.memory_space<vmem>>, %arg12: memref<1x16x64xbf16, #tpu.memory_space<vmem>>, %arg13: memref<1x64xf32, #tpu.memory_space<vmem>>, %arg14: memref<1x64xf32, #tpu.memory_space<vmem>>, %arg15: memref<1x1xf32, #tpu.memory_space<vmem>>, %arg16: memref<1x1x1xf32, #tpu.memory_space<vmem>>) attributes {dimension_semantics = [#tpu.dimension_semantics<parallel>], iteration_bounds = array<i64: 2>, scalar_prefetch = 0 : i64, scratch_operands = 0 : i64, tpu.core_type = #tpu.core_type<tc>, window_params = [{transform_indices = @transform_0, window_bounds = array<i64: 1, 48, 192>}, {pipeline_mode = #tpu.pipeline_mode<synchronous>, transform_indices = @transform_1, window_bounds = array<i64: 7, 14, 48>}, {pipeline_mode = #tpu.pipeline_mode<synchronous>, transform_indices = @transform_2, window_bounds = array<i64: 7, 192, 224>}, {pipeline_mode = #tpu.pipeline_mode<synchronous>, transform_indices = @transform_3, window_bounds = array<i64: 1, 224>}, {pipeline_mode = #tpu.pipeline_mode<synchronous>, transform_indices = @transform_4, window_bounds = array<i64: 5, 5, 14>}, {pipeline_mode = #tpu.pipeline_mode<synchronous>, transform_indices = @transform_5, window_bounds = array<i64: 5, 224, 80>}, {pipeline_mode = #tpu.pipeline_mode<synchronous>, transform_indices = @transform_6, window_bounds = array<i64: 1, 80>}, {pipeline_mode = #tpu.pipeline_mode<synchronous>, transform_indices = @transform_7, window_bounds = array<i64: 3, 80, 48>}, {pipeline_mode = #tpu.pipeline_mode<synchronous>, transform_indices = @transform_8, window_bounds = array<i64: 1, 48>}, {pipeline_mode = #tpu.pipeline_mode<synchronous>, transform_indices = @transform_9, window_bounds = array<i64: 3, 48, 16>}, {pipeline_mode = #tpu.pipeline_mode<synchronous>, transform_indices = @transform_10, window_bounds = array<i64: 1, 16>}, {pipeline_mode = #tpu.pipeline_mode<synchronous>, transform_indices = @transform_11, window_bounds = array<i64: 1, 16, 64>}, {pipeline_mode = #tpu.pipeline_mode<synchronous>, transform_indices = @transform_12, window_bounds = array<i64: 1, 64>}, {pipeline_mode = #tpu.pipeline_mode<synchronous>, transform_indices = @transform_13, window_bounds = array<i64: 1, 64>}, {pipeline_mode = #tpu.pipeline_mode<synchronous>, transform_indices = @transform_14, window_bounds = array<i64: 1, 1>}, {transform_indices = @transform_15, window_bounds = array<i64: 1, 1, 1>}]} {
    %c0 = arith.constant 0 : index
    %c0_0 = arith.constant 0 : index
    %c0_1 = arith.constant 0 : index
    %0 = vector.load %arg1[%c0, %c0_0, %c0_1] : memref<1x48x192xf32, #tpu.memory_space<vmem>>, vector<1x48x192xf32>
    %1 = vector.shape_cast %0 : vector<1x48x192xf32> to vector<48x192xf32>
    %c0_2 = arith.constant 0 : index
    %c0_3 = arith.constant 0 : index
    %c0_4 = arith.constant 0 : index
    %2 = vector.load %arg2[%c0_2, %c0_3, %c0_4] : memref<7x14x48xf32, #tpu.memory_space<vmem>>, vector<1x14x48xf32>
    %3 = vector.shape_cast %2 : vector<1x14x48xf32> to vector<14x48xf32>
    %cst = arith.constant dense<0.000000e+00> : vector<14x192xf32>
    %4 = tpu.matmul %3, %1, %cst {dimension_numbers = #tpu.dot_dimension_numbers<[1], [0], [0], [1], [0, 0, 1, 1], [], []>} : vector<14x48xf32>, vector<48x192xf32>, vector<14x192xf32> -> vector<14x192xf32>
    %5 = arith.truncf %4 : vector<14x192xf32> to vector<14x192xbf16>
    %c0_5 = arith.constant 0 : index
    %c0_6 = arith.constant 0 : index
    %c0_7 = arith.constant 0 : index
    %6 = vector.load %arg3[%c0_5, %c0_6, %c0_7] : memref<7x192x224xbf16, #tpu.memory_space<vmem>>, vector<1x192x224xbf16>
    %7 = vector.shape_cast %6 : vector<1x192x224xbf16> to vector<192x224xbf16>
    %cst_8 = arith.constant dense<0.000000e+00> : vector<14x224xf32>
    %8 = tpu.matmul %5, %7, %cst_8 {dimension_numbers = #tpu.dot_dimension_numbers<[1], [0], [0], [1], [0, 0, 1, 1], [], []>} : vector<14x192xbf16>, vector<192x224xbf16>, vector<14x224xf32> -> vector<14x224xf32>
    %c1 = arith.constant 1 : index
    %c0_9 = arith.constant 0 : index
    %c0_10 = arith.constant 0 : index
    %9 = vector.load %arg2[%c1, %c0_9, %c0_10] : memref<7x14x48xf32, #tpu.memory_space<vmem>>, vector<1x14x48xf32>
    %10 = vector.shape_cast %9 : vector<1x14x48xf32> to vector<14x48xf32>
    %cst_11 = arith.constant dense<0.000000e+00> : vector<14x192xf32>
    %11 = tpu.matmul %10, %1, %cst_11 {dimension_numbers = #tpu.dot_dimension_numbers<[1], [0], [0], [1], [0, 0, 1, 1], [], []>} : vector<14x48xf32>, vector<48x192xf32>, vector<14x192xf32> -> vector<14x192xf32>
    %12 = arith.truncf %11 : vector<14x192xf32> to vector<14x192xbf16>
    %c1_12 = arith.constant 1 : index
    %c0_13 = arith.constant 0 : index
    %c0_14 = arith.constant 0 : index
    %13 = vector.load %arg3[%c1_12, %c0_13, %c0_14] : memref<7x192x224xbf16, #tpu.memory_space<vmem>>, vector<1x192x224xbf16>
    %14 = vector.shape_cast %13 : vector<1x192x224xbf16> to vector<192x224xbf16>
    %cst_15 = arith.constant dense<0.000000e+00> : vector<14x224xf32>
    %15 = tpu.matmul %12, %14, %cst_15 {dimension_numbers = #tpu.dot_dimension_numbers<[1], [0], [0], [1], [0, 0, 1, 1], [], []>} : vector<14x192xbf16>, vector<192x224xbf16>, vector<14x224xf32> -> vector<14x224xf32>
    %16 = arith.addf %8, %15 : vector<14x224xf32>
    %c2 = arith.constant 2 : index
    %c0_16 = arith.constant 0 : index
    %c0_17 = arith.constant 0 : index
    %17 = vector.load %arg2[%c2, %c0_16, %c0_17] : memref<7x14x48xf32, #tpu.memory_space<vmem>>, vector<1x14x48xf32>
    %18 = vector.shape_cast %17 : vector<1x14x48xf32> to vector<14x48xf32>
    %cst_18 = arith.constant dense<0.000000e+00> : vector<14x192xf32>
    %19 = tpu.matmul %18, %1, %cst_18 {dimension_numbers = #tpu.dot_dimension_numbers<[1], [0], [0], [1], [0, 0, 1, 1], [], []>} : vector<14x48xf32>, vector<48x192xf32>, vector<14x192xf32> -> vector<14x192xf32>
    %20 = arith.truncf %19 : vector<14x192xf32> to vector<14x192xbf16>
    %c2_19 = arith.constant 2 : index
    %c0_20 = arith.constant 0 : index
    %c0_21 = arith.constant 0 : index
    %21 = vector.load %arg3[%c2_19, %c0_20, %c0_21] : memref<7x192x224xbf16, #tpu.memory_space<vmem>>, vector<1x192x224xbf16>
    %22 = vector.shape_cast %21 : vector<1x192x224xbf16> to vector<192x224xbf16>
    %cst_22 = arith.constant dense<0.000000e+00> : vector<14x224xf32>
    %23 = tpu.matmul %20, %22, %cst_22 {dimension_numbers = #tpu.dot_dimension_numbers<[1], [0], [0], [1], [0, 0, 1, 1], [], []>} : vector<14x192xbf16>, vector<192x224xbf16>, vector<14x224xf32> -> vector<14x224xf32>
    %24 = arith.addf %16, %23 : vector<14x224xf32>
    %c3 = arith.constant 3 : index
    %c0_23 = arith.constant 0 : index
    %c0_24 = arith.constant 0 : index
    %25 = vector.load %arg2[%c3, %c0_23, %c0_24] : memref<7x14x48xf32, #tpu.memory_space<vmem>>, vector<1x14x48xf32>
    %26 = vector.shape_cast %25 : vector<1x14x48xf32> to vector<14x48xf32>
    %cst_25 = arith.constant dense<0.000000e+00> : vector<14x192xf32>
    %27 = tpu.matmul %26, %1, %cst_25 {dimension_numbers = #tpu.dot_dimension_numbers<[1], [0], [0], [1], [0, 0, 1, 1], [], []>} : vector<14x48xf32>, vector<48x192xf32>, vector<14x192xf32> -> vector<14x192xf32>
    %28 = arith.truncf %27 : vector<14x192xf32> to vector<14x192xbf16>
    %c3_26 = arith.constant 3 : index
    %c0_27 = arith.constant 0 : index
    %c0_28 = arith.constant 0 : index
    %29 = vector.load %arg3[%c3_26, %c0_27, %c0_28] : memref<7x192x224xbf16, #tpu.memory_space<vmem>>, vector<1x192x224xbf16>
    %30 = vector.shape_cast %29 : vector<1x192x224xbf16> to vector<192x224xbf16>
    %cst_29 = arith.constant dense<0.000000e+00> : vector<14x224xf32>
    %31 = tpu.matmul %28, %30, %cst_29 {dimension_numbers = #tpu.dot_dimension_numbers<[1], [0], [0], [1], [0, 0, 1, 1], [], []>} : vector<14x192xbf16>, vector<192x224xbf16>, vector<14x224xf32> -> vector<14x224xf32>
    %32 = arith.addf %24, %31 : vector<14x224xf32>
    %c4 = arith.constant 4 : index
    %c0_30 = arith.constant 0 : index
    %c0_31 = arith.constant 0 : index
    %33 = vector.load %arg2[%c4, %c0_30, %c0_31] : memref<7x14x48xf32, #tpu.memory_space<vmem>>, vector<1x14x48xf32>
    %34 = vector.shape_cast %33 : vector<1x14x48xf32> to vector<14x48xf32>
    %cst_32 = arith.constant dense<0.000000e+00> : vector<14x192xf32>
    %35 = tpu.matmul %34, %1, %cst_32 {dimension_numbers = #tpu.dot_dimension_numbers<[1], [0], [0], [1], [0, 0, 1, 1], [], []>} : vector<14x48xf32>, vector<48x192xf32>, vector<14x192xf32> -> vector<14x192xf32>
    %36 = arith.truncf %35 : vector<14x192xf32> to vector<14x192xbf16>
    %c4_33 = arith.constant 4 : index
    %c0_34 = arith.constant 0 : index
    %c0_35 = arith.constant 0 : index
    %37 = vector.load %arg3[%c4_33, %c0_34, %c0_35] : memref<7x192x224xbf16, #tpu.memory_space<vmem>>, vector<1x192x224xbf16>
    %38 = vector.shape_cast %37 : vector<1x192x224xbf16> to vector<192x224xbf16>
    %cst_36 = arith.constant dense<0.000000e+00> : vector<14x224xf32>
    %39 = tpu.matmul %36, %38, %cst_36 {dimension_numbers = #tpu.dot_dimension_numbers<[1], [0], [0], [1], [0, 0, 1, 1], [], []>} : vector<14x192xbf16>, vector<192x224xbf16>, vector<14x224xf32> -> vector<14x224xf32>
    %40 = arith.addf %32, %39 : vector<14x224xf32>
    %c5 = arith.constant 5 : index
    %c0_37 = arith.constant 0 : index
    %c0_38 = arith.constant 0 : index
    %41 = vector.load %arg2[%c5, %c0_37, %c0_38] : memref<7x14x48xf32, #tpu.memory_space<vmem>>, vector<1x14x48xf32>
    %42 = vector.shape_cast %41 : vector<1x14x48xf32> to vector<14x48xf32>
    %cst_39 = arith.constant dense<0.000000e+00> : vector<14x192xf32>
    %43 = tpu.matmul %42, %1, %cst_39 {dimension_numbers = #tpu.dot_dimension_numbers<[1], [0], [0], [1], [0, 0, 1, 1], [], []>} : vector<14x48xf32>, vector<48x192xf32>, vector<14x192xf32> -> vector<14x192xf32>
    %44 = arith.truncf %43 : vector<14x192xf32> to vector<14x192xbf16>
    %c5_40 = arith.constant 5 : index
    %c0_41 = arith.constant 0 : index
    %c0_42 = arith.constant 0 : index
    %45 = vector.load %arg3[%c5_40, %c0_41, %c0_42] : memref<7x192x224xbf16, #tpu.memory_space<vmem>>, vector<1x192x224xbf16>
    %46 = vector.shape_cast %45 : vector<1x192x224xbf16> to vector<192x224xbf16>
    %cst_43 = arith.constant dense<0.000000e+00> : vector<14x224xf32>
    %47 = tpu.matmul %44, %46, %cst_43 {dimension_numbers = #tpu.dot_dimension_numbers<[1], [0], [0], [1], [0, 0, 1, 1], [], []>} : vector<14x192xbf16>, vector<192x224xbf16>, vector<14x224xf32> -> vector<14x224xf32>
    %48 = arith.addf %40, %47 : vector<14x224xf32>
    %c6 = arith.constant 6 : index
    %c0_44 = arith.constant 0 : index
    %c0_45 = arith.constant 0 : index
    %49 = vector.load %arg2[%c6, %c0_44, %c0_45] : memref<7x14x48xf32, #tpu.memory_space<vmem>>, vector<1x14x48xf32>
    %50 = vector.shape_cast %49 : vector<1x14x48xf32> to vector<14x48xf32>
    %cst_46 = arith.constant dense<0.000000e+00> : vector<14x192xf32>
    %51 = tpu.matmul %50, %1, %cst_46 {dimension_numbers = #tpu.dot_dimension_numbers<[1], [0], [0], [1], [0, 0, 1, 1], [], []>} : vector<14x48xf32>, vector<48x192xf32>, vector<14x192xf32> -> vector<14x192xf32>
    %52 = arith.truncf %51 : vector<14x192xf32> to vector<14x192xbf16>
    %c6_47 = arith.constant 6 : index
    %c0_48 = arith.constant 0 : index
    %c0_49 = arith.constant 0 : index
    %53 = vector.load %arg3[%c6_47, %c0_48, %c0_49] : memref<7x192x224xbf16, #tpu.memory_space<vmem>>, vector<1x192x224xbf16>
    %54 = vector.shape_cast %53 : vector<1x192x224xbf16> to vector<192x224xbf16>
    %cst_50 = arith.constant dense<0.000000e+00> : vector<14x224xf32>
    %55 = tpu.matmul %52, %54, %cst_50 {dimension_numbers = #tpu.dot_dimension_numbers<[1], [0], [0], [1], [0, 0, 1, 1], [], []>} : vector<14x192xbf16>, vector<192x224xbf16>, vector<14x224xf32> -> vector<14x224xf32>
    %56 = arith.addf %48, %55 : vector<14x224xf32>
    %c0_51 = arith.constant 0 : index
    %c0_52 = arith.constant 0 : index
    %57 = vector.load %arg4[%c0_51, %c0_52] : memref<1x224xf32, #tpu.memory_space<vmem>>, vector<1x224xf32>
    %58 = vector.broadcast %57 : vector<1x224xf32> to vector<14x224xf32>
    %59 = arith.addf %56, %58 : vector<14x224xf32>
    %cst_53 = arith.constant 0.000000e+00 : f32
    %60 = vector.broadcast %cst_53 : f32 to vector<14x224xf32>
    %61 = arith.cmpf oge, %59, %60 : vector<14x224xf32>
    %cst_54 = arith.constant 0.00999999977 : f32
    %62 = vector.broadcast %cst_54 : f32 to vector<14x224xf32>
    %63 = arith.mulf %62, %59 : vector<14x224xf32>
    %64 = arith.select %61, %59, %63 : vector<14x224xi1>, vector<14x224xf32>
    %c0_55 = arith.constant 0 : index
    %c0_56 = arith.constant 0 : index
    %c0_57 = arith.constant 0 : index
    %65 = vector.load %arg5[%c0_55, %c0_56, %c0_57] : memref<5x5x14xf32, #tpu.memory_space<vmem>>, vector<1x5x14xf32>
    %66 = vector.shape_cast %65 : vector<1x5x14xf32> to vector<5x14xf32>
    %cst_58 = arith.constant dense<0.000000e+00> : vector<5x224xf32>
    %67 = tpu.matmul %66, %64, %cst_58 {dimension_numbers = #tpu.dot_dimension_numbers<[1], [0], [0], [1], [0, 0, 1, 1], [], []>} : vector<5x14xf32>, vector<14x224xf32>, vector<5x224xf32> -> vector<5x224xf32>
    %68 = arith.truncf %67 : vector<5x224xf32> to vector<5x224xbf16>
    %c0_59 = arith.constant 0 : index
    %c0_60 = arith.constant 0 : index
    %c0_61 = arith.constant 0 : index
    %69 = vector.load %arg6[%c0_59, %c0_60, %c0_61] : memref<5x224x80xbf16, #tpu.memory_space<vmem>>, vector<1x224x80xbf16>
    %70 = vector.shape_cast %69 : vector<1x224x80xbf16> to vector<224x80xbf16>
    %cst_62 = arith.constant dense<0.000000e+00> : vector<5x80xf32>
    %71 = tpu.matmul %68, %70, %cst_62 {dimension_numbers = #tpu.dot_dimension_numbers<[1], [0], [0], [1], [0, 0, 1, 1], [], []>} : vector<5x224xbf16>, vector<224x80xbf16>, vector<5x80xf32> -> vector<5x80xf32>
    %c1_63 = arith.constant 1 : index
    %c0_64 = arith.constant 0 : index
    %c0_65 = arith.constant 0 : index
    %72 = vector.load %arg5[%c1_63, %c0_64, %c0_65] : memref<5x5x14xf32, #tpu.memory_space<vmem>>, vector<1x5x14xf32>
    %73 = vector.shape_cast %72 : vector<1x5x14xf32> to vector<5x14xf32>
    %cst_66 = arith.constant dense<0.000000e+00> : vector<5x224xf32>
    %74 = tpu.matmul %73, %64, %cst_66 {dimension_numbers = #tpu.dot_dimension_numbers<[1], [0], [0], [1], [0, 0, 1, 1], [], []>} : vector<5x14xf32>, vector<14x224xf32>, vector<5x224xf32> -> vector<5x224xf32>
    %75 = arith.truncf %74 : vector<5x224xf32> to vector<5x224xbf16>
    %c1_67 = arith.constant 1 : index
    %c0_68 = arith.constant 0 : index
    %c0_69 = arith.constant 0 : index
    %76 = vector.load %arg6[%c1_67, %c0_68, %c0_69] : memref<5x224x80xbf16, #tpu.memory_space<vmem>>, vector<1x224x80xbf16>
    %77 = vector.shape_cast %76 : vector<1x224x80xbf16> to vector<224x80xbf16>
    %cst_70 = arith.constant dense<0.000000e+00> : vector<5x80xf32>
    %78 = tpu.matmul %75, %77, %cst_70 {dimension_numbers = #tpu.dot_dimension_numbers<[1], [0], [0], [1], [0, 0, 1, 1], [], []>} : vector<5x224xbf16>, vector<224x80xbf16>, vector<5x80xf32> -> vector<5x80xf32>
    %79 = arith.addf %71, %78 : vector<5x80xf32>
    %c2_71 = arith.constant 2 : index
    %c0_72 = arith.constant 0 : index
    %c0_73 = arith.constant 0 : index
    %80 = vector.load %arg5[%c2_71, %c0_72, %c0_73] : memref<5x5x14xf32, #tpu.memory_space<vmem>>, vector<1x5x14xf32>
    %81 = vector.shape_cast %80 : vector<1x5x14xf32> to vector<5x14xf32>
    %cst_74 = arith.constant dense<0.000000e+00> : vector<5x224xf32>
    %82 = tpu.matmul %81, %64, %cst_74 {dimension_numbers = #tpu.dot_dimension_numbers<[1], [0], [0], [1], [0, 0, 1, 1], [], []>} : vector<5x14xf32>, vector<14x224xf32>, vector<5x224xf32> -> vector<5x224xf32>
    %83 = arith.truncf %82 : vector<5x224xf32> to vector<5x224xbf16>
    %c2_75 = arith.constant 2 : index
    %c0_76 = arith.constant 0 : index
    %c0_77 = arith.constant 0 : index
    %84 = vector.load %arg6[%c2_75, %c0_76, %c0_77] : memref<5x224x80xbf16, #tpu.memory_space<vmem>>, vector<1x224x80xbf16>
    %85 = vector.shape_cast %84 : vector<1x224x80xbf16> to vector<224x80xbf16>
    %cst_78 = arith.constant dense<0.000000e+00> : vector<5x80xf32>
    %86 = tpu.matmul %83, %85, %cst_78 {dimension_numbers = #tpu.dot_dimension_numbers<[1], [0], [0], [1], [0, 0, 1, 1], [], []>} : vector<5x224xbf16>, vector<224x80xbf16>, vector<5x80xf32> -> vector<5x80xf32>
    %87 = arith.addf %79, %86 : vector<5x80xf32>
    %c3_79 = arith.constant 3 : index
    %c0_80 = arith.constant 0 : index
    %c0_81 = arith.constant 0 : index
    %88 = vector.load %arg5[%c3_79, %c0_80, %c0_81] : memref<5x5x14xf32, #tpu.memory_space<vmem>>, vector<1x5x14xf32>
    %89 = vector.shape_cast %88 : vector<1x5x14xf32> to vector<5x14xf32>
    %cst_82 = arith.constant dense<0.000000e+00> : vector<5x224xf32>
    %90 = tpu.matmul %89, %64, %cst_82 {dimension_numbers = #tpu.dot_dimension_numbers<[1], [0], [0], [1], [0, 0, 1, 1], [], []>} : vector<5x14xf32>, vector<14x224xf32>, vector<5x224xf32> -> vector<5x224xf32>
    %91 = arith.truncf %90 : vector<5x224xf32> to vector<5x224xbf16>
    %c3_83 = arith.constant 3 : index
    %c0_84 = arith.constant 0 : index
    %c0_85 = arith.constant 0 : index
    %92 = vector.load %arg6[%c3_83, %c0_84, %c0_85] : memref<5x224x80xbf16, #tpu.memory_space<vmem>>, vector<1x224x80xbf16>
    %93 = vector.shape_cast %92 : vector<1x224x80xbf16> to vector<224x80xbf16>
    %cst_86 = arith.constant dense<0.000000e+00> : vector<5x80xf32>
    %94 = tpu.matmul %91, %93, %cst_86 {dimension_numbers = #tpu.dot_dimension_numbers<[1], [0], [0], [1], [0, 0, 1, 1], [], []>} : vector<5x224xbf16>, vector<224x80xbf16>, vector<5x80xf32> -> vector<5x80xf32>
    %95 = arith.addf %87, %94 : vector<5x80xf32>
    %c4_87 = arith.constant 4 : index
    %c0_88 = arith.constant 0 : index
    %c0_89 = arith.constant 0 : index
    %96 = vector.load %arg5[%c4_87, %c0_88, %c0_89] : memref<5x5x14xf32, #tpu.memory_space<vmem>>, vector<1x5x14xf32>
    %97 = vector.shape_cast %96 : vector<1x5x14xf32> to vector<5x14xf32>
    %cst_90 = arith.constant dense<0.000000e+00> : vector<5x224xf32>
    %98 = tpu.matmul %97, %64, %cst_90 {dimension_numbers = #tpu.dot_dimension_numbers<[1], [0], [0], [1], [0, 0, 1, 1], [], []>} : vector<5x14xf32>, vector<14x224xf32>, vector<5x224xf32> -> vector<5x224xf32>
    %99 = arith.truncf %98 : vector<5x224xf32> to vector<5x224xbf16>
    %c4_91 = arith.constant 4 : index
    %c0_92 = arith.constant 0 : index
    %c0_93 = arith.constant 0 : index
    %100 = vector.load %arg6[%c4_91, %c0_92, %c0_93] : memref<5x224x80xbf16, #tpu.memory_space<vmem>>, vector<1x224x80xbf16>
    %101 = vector.shape_cast %100 : vector<1x224x80xbf16> to vector<224x80xbf16>
    %cst_94 = arith.constant dense<0.000000e+00> : vector<5x80xf32>
    %102 = tpu.matmul %99, %101, %cst_94 {dimension_numbers = #tpu.dot_dimension_numbers<[1], [0], [0], [1], [0, 0, 1, 1], [], []>} : vector<5x224xbf16>, vector<224x80xbf16>, vector<5x80xf32> -> vector<5x80xf32>
    %103 = arith.addf %95, %102 : vector<5x80xf32>
    %c0_95 = arith.constant 0 : index
    %c0_96 = arith.constant 0 : index
    %104 = vector.load %arg7[%c0_95, %c0_96] : memref<1x80xf32, #tpu.memory_space<vmem>>, vector<1x80xf32>
    %105 = vector.broadcast %104 : vector<1x80xf32> to vector<5x80xf32>
    %106 = arith.addf %103, %105 : vector<5x80xf32>
    %cst_97 = arith.constant 0.000000e+00 : f32
    %107 = vector.broadcast %cst_97 : f32 to vector<5x80xf32>
    %108 = arith.cmpf oge, %106, %107 : vector<5x80xf32>
    %cst_98 = arith.constant 0.00999999977 : f32
    %109 = vector.broadcast %cst_98 : f32 to vector<5x80xf32>
    %110 = arith.mulf %109, %106 : vector<5x80xf32>
    %111 = arith.select %108, %106, %110 : vector<5x80xi1>, vector<5x80xf32>
    %112 = vector.extract_strided_slice %111 {offsets = [0, 0], sizes = [3, 80], strides = [1, 1]} : vector<5x80xf32> to vector<3x80xf32>
    %113 = arith.truncf %112 : vector<3x80xf32> to vector<3x80xbf16>
    %c0_99 = arith.constant 0 : index
    %c0_100 = arith.constant 0 : index
    %c0_101 = arith.constant 0 : index
    %114 = vector.load %arg8[%c0_99, %c0_100, %c0_101] : memref<3x80x48xbf16, #tpu.memory_space<vmem>>, vector<1x80x48xbf16>
    %115 = vector.shape_cast %114 : vector<1x80x48xbf16> to vector<80x48xbf16>
    %cst_102 = arith.constant dense<0.000000e+00> : vector<3x48xf32>
    %116 = tpu.matmul %113, %115, %cst_102 {dimension_numbers = #tpu.dot_dimension_numbers<[1], [0], [0], [1], [0, 0, 1, 1], [], []>} : vector<3x80xbf16>, vector<80x48xbf16>, vector<3x48xf32> -> vector<3x48xf32>
    %117 = vector.extract_strided_slice %111 {offsets = [1, 0], sizes = [3, 80], strides = [1, 1]} : vector<5x80xf32> to vector<3x80xf32>
    %118 = arith.truncf %117 : vector<3x80xf32> to vector<3x80xbf16>
    %c1_103 = arith.constant 1 : index
    %c0_104 = arith.constant 0 : index
    %c0_105 = arith.constant 0 : index
    %119 = vector.load %arg8[%c1_103, %c0_104, %c0_105] : memref<3x80x48xbf16, #tpu.memory_space<vmem>>, vector<1x80x48xbf16>
    %120 = vector.shape_cast %119 : vector<1x80x48xbf16> to vector<80x48xbf16>
    %cst_106 = arith.constant dense<0.000000e+00> : vector<3x48xf32>
    %121 = tpu.matmul %118, %120, %cst_106 {dimension_numbers = #tpu.dot_dimension_numbers<[1], [0], [0], [1], [0, 0, 1, 1], [], []>} : vector<3x80xbf16>, vector<80x48xbf16>, vector<3x48xf32> -> vector<3x48xf32>
    %122 = arith.addf %116, %121 : vector<3x48xf32>
    %123 = vector.extract_strided_slice %111 {offsets = [2, 0], sizes = [3, 80], strides = [1, 1]} : vector<5x80xf32> to vector<3x80xf32>
    %124 = arith.truncf %123 : vector<3x80xf32> to vector<3x80xbf16>
    %c2_107 = arith.constant 2 : index
    %c0_108 = arith.constant 0 : index
    %c0_109 = arith.constant 0 : index
    %125 = vector.load %arg8[%c2_107, %c0_108, %c0_109] : memref<3x80x48xbf16, #tpu.memory_space<vmem>>, vector<1x80x48xbf16>
    %126 = vector.shape_cast %125 : vector<1x80x48xbf16> to vector<80x48xbf16>
    %cst_110 = arith.constant dense<0.000000e+00> : vector<3x48xf32>
    %127 = tpu.matmul %124, %126, %cst_110 {dimension_numbers = #tpu.dot_dimension_numbers<[1], [0], [0], [1], [0, 0, 1, 1], [], []>} : vector<3x80xbf16>, vector<80x48xbf16>, vector<3x48xf32> -> vector<3x48xf32>
    %128 = arith.addf %122, %127 : vector<3x48xf32>
    %c0_111 = arith.constant 0 : index
    %c0_112 = arith.constant 0 : index
    %129 = vector.load %arg9[%c0_111, %c0_112] : memref<1x48xf32, #tpu.memory_space<vmem>>, vector<1x48xf32>
    %130 = vector.broadcast %129 : vector<1x48xf32> to vector<3x48xf32>
    %131 = arith.addf %128, %130 : vector<3x48xf32>
    %cst_113 = arith.constant 0.000000e+00 : f32
    %132 = vector.broadcast %cst_113 : f32 to vector<3x48xf32>
    %133 = arith.cmpf oge, %131, %132 : vector<3x48xf32>
    %cst_114 = arith.constant 0.00999999977 : f32
    %134 = vector.broadcast %cst_114 : f32 to vector<3x48xf32>
    %135 = arith.mulf %134, %131 : vector<3x48xf32>
    %136 = arith.select %133, %131, %135 : vector<3x48xi1>, vector<3x48xf32>
    %137 = vector.extract_strided_slice %136 {offsets = [0, 0], sizes = [1, 48], strides = [1, 1]} : vector<3x48xf32> to vector<1x48xf32>
    %138 = arith.truncf %137 : vector<1x48xf32> to vector<1x48xbf16>
    %c0_115 = arith.constant 0 : index
    %c0_116 = arith.constant 0 : index
    %c0_117 = arith.constant 0 : index
    %139 = vector.load %arg10[%c0_115, %c0_116, %c0_117] : memref<3x48x16xbf16, #tpu.memory_space<vmem>>, vector<1x48x16xbf16>
    %140 = vector.shape_cast %139 : vector<1x48x16xbf16> to vector<48x16xbf16>
    %cst_118 = arith.constant dense<0.000000e+00> : vector<1x16xf32>
    %141 = tpu.matmul %138, %140, %cst_118 {dimension_numbers = #tpu.dot_dimension_numbers<[1], [0], [0], [1], [0, 0, 1, 1], [], []>} : vector<1x48xbf16>, vector<48x16xbf16>, vector<1x16xf32> -> vector<1x16xf32>
    %142 = vector.extract_strided_slice %136 {offsets = [1, 0], sizes = [1, 48], strides = [1, 1]} : vector<3x48xf32> to vector<1x48xf32>
    %143 = arith.truncf %142 : vector<1x48xf32> to vector<1x48xbf16>
    %c1_119 = arith.constant 1 : index
    %c0_120 = arith.constant 0 : index
    %c0_121 = arith.constant 0 : index
    %144 = vector.load %arg10[%c1_119, %c0_120, %c0_121] : memref<3x48x16xbf16, #tpu.memory_space<vmem>>, vector<1x48x16xbf16>
    %145 = vector.shape_cast %144 : vector<1x48x16xbf16> to vector<48x16xbf16>
    %cst_122 = arith.constant dense<0.000000e+00> : vector<1x16xf32>
    %146 = tpu.matmul %143, %145, %cst_122 {dimension_numbers = #tpu.dot_dimension_numbers<[1], [0], [0], [1], [0, 0, 1, 1], [], []>} : vector<1x48xbf16>, vector<48x16xbf16>, vector<1x16xf32> -> vector<1x16xf32>
    %147 = arith.addf %141, %146 : vector<1x16xf32>
    %148 = vector.extract_strided_slice %136 {offsets = [2, 0], sizes = [1, 48], strides = [1, 1]} : vector<3x48xf32> to vector<1x48xf32>
    %149 = arith.truncf %148 : vector<1x48xf32> to vector<1x48xbf16>
    %c2_123 = arith.constant 2 : index
    %c0_124 = arith.constant 0 : index
    %c0_125 = arith.constant 0 : index
    %150 = vector.load %arg10[%c2_123, %c0_124, %c0_125] : memref<3x48x16xbf16, #tpu.memory_space<vmem>>, vector<1x48x16xbf16>
    %151 = vector.shape_cast %150 : vector<1x48x16xbf16> to vector<48x16xbf16>
    %cst_126 = arith.constant dense<0.000000e+00> : vector<1x16xf32>
    %152 = tpu.matmul %149, %151, %cst_126 {dimension_numbers = #tpu.dot_dimension_numbers<[1], [0], [0], [1], [0, 0, 1, 1], [], []>} : vector<1x48xbf16>, vector<48x16xbf16>, vector<1x16xf32> -> vector<1x16xf32>
    %153 = arith.addf %147, %152 : vector<1x16xf32>
    %c0_127 = arith.constant 0 : index
    %c0_128 = arith.constant 0 : index
    %154 = vector.load %arg11[%c0_127, %c0_128] : memref<1x16xf32, #tpu.memory_space<vmem>>, vector<1x16xf32>
    %155 = arith.addf %153, %154 : vector<1x16xf32>
    %cst_129 = arith.constant 0.000000e+00 : f32
    %156 = vector.broadcast %cst_129 : f32 to vector<1x16xf32>
    %157 = arith.cmpf oge, %155, %156 : vector<1x16xf32>
    %cst_130 = arith.constant 0.00999999977 : f32
    %158 = vector.broadcast %cst_130 : f32 to vector<1x16xf32>
    %159 = arith.mulf %158, %155 : vector<1x16xf32>
    %160 = arith.select %157, %155, %159 : vector<1x16xi1>, vector<1x16xf32>
    %161 = arith.truncf %160 : vector<1x16xf32> to vector<1x16xbf16>
    %c0_131 = arith.constant 0 : index
    %c0_132 = arith.constant 0 : index
    %c0_133 = arith.constant 0 : index
    %162 = vector.load %arg12[%c0_131, %c0_132, %c0_133] : memref<1x16x64xbf16, #tpu.memory_space<vmem>>, vector<1x16x64xbf16>
    %163 = vector.shape_cast %162 : vector<1x16x64xbf16> to vector<16x64xbf16>
    %cst_134 = arith.constant dense<0.000000e+00> : vector<1x64xf32>
    %164 = tpu.matmul %161, %163, %cst_134 {dimension_numbers = #tpu.dot_dimension_numbers<[1], [0], [0], [1], [0, 0, 1, 1], [], []>} : vector<1x16xbf16>, vector<16x64xbf16>, vector<1x64xf32> -> vector<1x64xf32>
    %c0_135 = arith.constant 0 : index
    %c0_136 = arith.constant 0 : index
    %165 = vector.load %arg13[%c0_135, %c0_136] : memref<1x64xf32, #tpu.memory_space<vmem>>, vector<1x64xf32>
    %166 = arith.addf %164, %165 : vector<1x64xf32>
    %cst_137 = arith.constant 0.000000e+00 : f32
    %167 = vector.broadcast %cst_137 : f32 to vector<1x64xf32>
    %168 = arith.cmpf oge, %166, %167 : vector<1x64xf32>
    %cst_138 = arith.constant 0.00999999977 : f32
    %169 = vector.broadcast %cst_138 : f32 to vector<1x64xf32>
    %170 = arith.mulf %169, %166 : vector<1x64xf32>
    %171 = arith.select %168, %166, %170 : vector<1x64xi1>, vector<1x64xf32>
    %c0_139 = arith.constant 0 : index
    %c0_140 = arith.constant 0 : index
    %172 = vector.load %arg14[%c0_139, %c0_140] : memref<1x64xf32, #tpu.memory_space<vmem>>, vector<1x64xf32>
    %173 = arith.mulf %171, %172 : vector<1x64xf32>
    %cst_141 = arith.constant dense<0.000000e+00> : vector<1xf32>
    %174 = vector.multi_reduction <add>, %173, %cst_141 [1] : vector<1x64xf32> to vector<1xf32>
    %175 = vector.shape_cast %174 : vector<1xf32> to vector<1x1xf32>
    %c0_142 = arith.constant 0 : index
    %c0_143 = arith.constant 0 : index
    %176 = vector.load %arg15[%c0_142, %c0_143] : memref<1x1xf32, #tpu.memory_space<vmem>>, vector<1x1xf32>
    %177 = arith.addf %175, %176 : vector<1x1xf32>
    %178 = math.absf %177 : vector<1x1xf32>
    %cst_144 = arith.constant 0.000000e+00 : f32
    %179 = vector.broadcast %cst_144 : f32 to vector<1x1xf32>
    %180 = arith.subf %179, %178 : vector<1x1xf32>
    %181 = math.exp %180 : vector<1x1xf32>
    %cst_145 = arith.constant 0.000000e+00 : f32
    %182 = vector.broadcast %cst_145 : f32 to vector<1x1xf32>
    %183 = arith.cmpf oge, %177, %182 : vector<1x1xf32>
    %cst_146 = arith.constant 1.000000e+00 : f32
    %184 = vector.broadcast %cst_146 : f32 to vector<1x1xf32>
    %185 = arith.addf %184, %181 : vector<1x1xf32>
    %cst_147 = arith.constant 1.000000e+00 : f32
    %186 = vector.broadcast %cst_147 : f32 to vector<1x1xf32>
    %187 = arith.divf %186, %185 : vector<1x1xf32>
    %cst_148 = arith.constant 1.000000e+00 : f32
    %188 = vector.broadcast %cst_148 : f32 to vector<1x1xf32>
    %189 = arith.addf %188, %181 : vector<1x1xf32>
    %190 = arith.divf %181, %189 : vector<1x1xf32>
    %191 = arith.select %183, %187, %190 : vector<1x1xi1>, vector<1x1xf32>
    %c0_149 = arith.constant 0 : index
    %c0_150 = arith.constant 0 : index
    %c0_151 = arith.constant 0 : index
    %192 = vector.load %arg16[%c0_149, %c0_150, %c0_151] : memref<1x1x1xf32, #tpu.memory_space<vmem>>, vector<1x1x1xf32>
    %193 = vector.shape_cast %192 : vector<1x1x1xf32> to vector<1x1xf32>
    %194 = vector.shape_cast %191 : vector<1x1xf32> to vector<1x1x1xf32>
    tpu.vector_store %arg16[%c0_149, %c0_150, %c0_151], %194 {strides = array<i32>} : memref<1x1x1xf32, #tpu.memory_space<vmem>>, vector<1x1x1xf32>,
    return
  }
  func.func @transform_0(%arg0: i32) -> (i32, i32, i32) {
    %c0_i32 = arith.constant 0 : i32
    %c0_i32_0 = arith.constant 0 : i32
    %c0_i32_1 = arith.constant 0 : i32
    return %arg0, %c0_i32, %c0_i32_0 : i32, i32, i32
  }
  func.func @transform_1(%arg0: i32) -> (i32, i32, i32) {
    %c0_i32 = arith.constant 0 : i32
    %c0_i32_0 = arith.constant 0 : i32
    %c0_i32_1 = arith.constant 0 : i32
    %c0_i32_2 = arith.constant 0 : i32
    return %c0_i32, %c0_i32_0, %c0_i32_1 : i32, i32, i32
  }
  func.func @transform_2(%arg0: i32) -> (i32, i32, i32) {
    %c0_i32 = arith.constant 0 : i32
    %c0_i32_0 = arith.constant 0 : i32
    %c0_i32_1 = arith.constant 0 : i32
    %c0_i32_2 = arith.constant 0 : i32
    return %c0_i32, %c0_i32_0, %c0_i32_1 : i32, i32, i32
  }
  func.func @transform_3(%arg0: i32) -> (i32, i32) {
    %c0_i32 = arith.constant 0 : i32
    %c0_i32_0 = arith.constant 0 : i32
    %c0_i32_1 = arith.constant 0 : i32
    return %c0_i32, %c0_i32_0 : i32, i32
  }
  func.func @transform_4(%arg0: i32) -> (i32, i32, i32) {
    %c0_i32 = arith.constant 0 : i32
    %c0_i32_0 = arith.constant 0 : i32
    %c0_i32_1 = arith.constant 0 : i32
    %c0_i32_2 = arith.constant 0 : i32
    return %c0_i32, %c0_i32_0, %c0_i32_1 : i32, i32, i32
  }
  func.func @transform_5(%arg0: i32) -> (i32, i32, i32) {
    %c0_i32 = arith.constant 0 : i32
    %c0_i32_0 = arith.constant 0 : i32
    %c0_i32_1 = arith.constant 0 : i32
    %c0_i32_2 = arith.constant 0 : i32
    return %c0_i32, %c0_i32_0, %c0_i32_1 : i32, i32, i32
  }
  func.func @transform_6(%arg0: i32) -> (i32, i32) {
    %c0_i32 = arith.constant 0 : i32
    %c0_i32_0 = arith.constant 0 : i32
    %c0_i32_1 = arith.constant 0 : i32
    return %c0_i32, %c0_i32_0 : i32, i32
  }
  func.func @transform_7(%arg0: i32) -> (i32, i32, i32) {
    %c0_i32 = arith.constant 0 : i32
    %c0_i32_0 = arith.constant 0 : i32
    %c0_i32_1 = arith.constant 0 : i32
    %c0_i32_2 = arith.constant 0 : i32
    return %c0_i32, %c0_i32_0, %c0_i32_1 : i32, i32, i32
  }
  func.func @transform_8(%arg0: i32) -> (i32, i32) {
    %c0_i32 = arith.constant 0 : i32
    %c0_i32_0 = arith.constant 0 : i32
    %c0_i32_1 = arith.constant 0 : i32
    return %c0_i32, %c0_i32_0 : i32, i32
  }
  func.func @transform_9(%arg0: i32) -> (i32, i32, i32) {
    %c0_i32 = arith.constant 0 : i32
    %c0_i32_0 = arith.constant 0 : i32
    %c0_i32_1 = arith.constant 0 : i32
    %c0_i32_2 = arith.constant 0 : i32
    return %c0_i32, %c0_i32_0, %c0_i32_1 : i32, i32, i32
  }
  func.func @transform_10(%arg0: i32) -> (i32, i32) {
    %c0_i32 = arith.constant 0 : i32
    %c0_i32_0 = arith.constant 0 : i32
    %c0_i32_1 = arith.constant 0 : i32
    return %c0_i32, %c0_i32_0 : i32, i32
  }
  func.func @transform_11(%arg0: i32) -> (i32, i32, i32) {
    %c0_i32 = arith.constant 0 : i32
    %c0_i32_0 = arith.constant 0 : i32
    %c0_i32_1 = arith.constant 0 : i32
    %c0_i32_2 = arith.constant 0 : i32
    return %c0_i32, %c0_i32_0, %c0_i32_1 : i32, i32, i32
  }
  func.func @transform_12(%arg0: i32) -> (i32, i32) {
    %c0_i32 = arith.constant 0 : i32
    %c0_i32_0 = arith.constant 0 : i32
    %c0_i32_1 = arith.constant 0 : i32
    return %c0_i32, %c0_i32_0 : i32, i32
  }
  func.func @transform_13(%arg0: i32) -> (i32, i32) {
    %c0_i32 = arith.constant 0 : i32
    %c0_i32_0 = arith.constant 0 : i32
    %c0_i32_1 = arith.constant 0 : i32
    return %c0_i32, %c0_i32_0 : i32, i32
  }
  func.func @transform_14(%arg0: i32) -> (i32, i32) {
    %c0_i32 = arith.constant 0 : i32
    %c0_i32_0 = arith.constant 0 : i32
    %c0_i32_1 = arith.constant 0 : i32
    return %c0_i32, %c0_i32_0 : i32, i32
  }
  func.func @transform_15(%arg0: i32) -> (i32, i32, i32) {
    %c0_i32 = arith.constant 0 : i32
    %c0_i32_0 = arith.constant 0 : i32
    %c0_i32_1 = arith.constant 0 : i32
    return %arg0, %c0_i32, %c0_i32_0 : i32, i32, i32
  }
}

</mosaic_0001>

<bundles_post_ra>
// kernel: conv_reward_net_forward.1
= control target key start
LH: loop header
LB: loop body
LE: loop exit
PB: predicated region body
PF: predicated region fallthrough
CT: control target
= control target key end

     0   :  { %s6526_s0 = inlined_call_operand.vmem [shape: f32[2,48,192], index: 0, kind: input, shape index: {}]   ;;  %s6527_s1 = inlined_call_operand.vmem [shape: f32[7,14,48], index: 1, kind: input, shape index: {}]   ;;  %s6528_s2 = inlined_call_operand.vmem [shape: bf16[7,192,224], index: 2, kind: input, shape index: {}]   ;;  %s6529_s3 = inlined_call_operand.vmem [shape: f32[1,224], index: 3, kind: input, shape index: {}]   ;;  %s6530_s4 = inlined_call_operand.vmem [shape: f32[5,5,14], index: 4, kind: input, shape index: {}]   ;;  %s6531_s5 = inlined_call_operand.hbm [shape: bf16[5,224,80], index: 5, kind: input, shape index: {}]   ;;  %s6532_s6 = inlined_call_operand.vmem [shape: f32[1,80], index: 6, kind: input, shape index: {}]   ;;  %s6533_s7 = inlined_call_operand.vmem [shape: bf16[3,80,48], index: 7, kind: input, shape index: {}]   ;;  %s6534_s8 = inlined_call_operand.vmem [shape: f32[1,48], index: 8, kind: input, shape index: {}]   ;;  %s6535_s9 = inlined_call_operand.vmem [shape: bf16[3,48,16], index: 9, kind: input, shape index: {}]   ;;  %s6536_s10 = inlined_call_operand.vmem [shape: f32[1,16], index: 10, kind: input, shape index: {}]   ;;  %s6537_s11 = inlined_call_operand.vmem [shape: bf16[1,16,64], index: 11, kind: input, shape index: {}]   ;;  %s6538_s12 = inlined_call_operand.vmem [shape: f32[1,64], index: 12, kind: input, shape index: {}]   ;;  %s6539_s13 = inlined_call_operand.vmem [shape: f32[1,64], index: 13, kind: input, shape index: {}]   ;;  %s6540_s14 = inlined_call_operand.<no memory space> [shape: f32[1,1], index: 14, kind: input, shape index: {}]   ;;  %s6541_s15 = inlined_call_operand.vmem [shape: f32[2,1,1], index: 15, kind: output, shape index: {}]  }
   0x1   :  { %v20_v0 = vstv %s6540_s14 }
   0x2   :  { %21 = vst [vmem:[#allocation2] sm:$0x1] %v20_v0 }
   0x3   :  { %22 = vsyncpa [#allocation4], 0  ;;  %s5476_s20 = smov 0  }
   0x4 LB: > { %s5482_s21 = sadd.s32 4294967295, %s5385_s20   ;;  %p4338_p0 = scmp.ge.s32.totalorder %s5385_s20, 1  ;;  %s5385_s20 = sphi %s5476_s20, %s28_s20  }
   0x5   : > { %p379_p1 = scmp.lt.s32.totalorder %s5385_s20, 3  ;;  %s5387_s22 = smov [#allocation3]  }
   0x6   : > { %s403_s14 = sshll.u32 %s5387_s22, 4  ;;  %p4970_p3 = scmp.eq.s32.totalorder %s5482_s21, 0  ;;  %s404_s14 = int_to_ptr.vmem [resolvable:$true] %s403_s14 }
   0x7   : > { %p5486_p2 = pnand %p4338_p0, %p379_p1  ;;  %s5360_s24 = scalar_lea.vmem %s404_s14, 8960 }
   0x8   : > { %p5361_p7 = scmp.ne.s32.totalorder %s404_s14, %s5360_s24  ;;  %p5368_p10 = scmp.lt.s32.totalorder %s404_s14, %s404_s14 }
   0x9   : > { %p4966_p4 = pneg %p5486_p2  ;;  %p5369_p11 = scmp.lt.s32.totalorder %s5360_s24, %s5360_s24 }
   0xb   : > { %p4967_p5 = pnand %p4970_p3, %p4966_p4  ;;  %p5370_p12 = por %p5369_p11, %p5368_p10 }
   0xd   : > { %p5351_p6 = pneg %p4967_p5 }
   0xf   : > { %p5363_p8 = pnand %p5361_p7, %p5351_p6 }
  0x11   : > { %p5364_p9 = pneg %p5363_p8 }
  0x13   : > { %p5371_p13 = pnand %p5370_p12, %p5364_p9 }
  0x15   : > { %5374 = shalt.err (!%p5371_p13)
}
  0x16   : > { %s5388_s25 = smov 64   ;;  %s5389_s26 = smov 4  }
  0x17   : > { %4969 = dma.hbm_to_vmem [thread:$0]  (!%p4967_p5), %s6531_s5, 8960, %s404_s14, [#allocation4], %s5388_s25, %s5388_s25, %s5389_s26  }
  0x18   : > { %454 = sbr.rel (%p5486_p2) target bundleno = 2748 (0xabc), region = 80 }
  0x1d   : > { %5380 = dma.done.wait (%p4970_p3), [#allocation4], 8960  }
  0x1e   : > { %5382 = vsyncadd (%p4970_p3), [#allocation4], 4294958336  ;;  %p500_p0 = scmp.lt.s32.totalorder %s5482_s21, 1  ;;  %v5390_v1 = vmov 0.0   ;;  %v521_v14 = vld [vmem:[%s6527_s1] sm:$0xff]  ;;  %vm523_vm0 = vcmask 392192  }
  0x1f   : > { %594 = vmatprep.mubr.f32.mxu0 %v5390_v1  ;;  %706 = vmatprep.mubr.f32.mxu1 %v5390_v1  ;;  %v4346_v15 = vld [vmem:[%s6527_s1 + $0x10] sm:$0xff]  ;;  %v522_v19 = vld [vmem:[%s6527_s1 + $0x8] sm:$0x3f]  ;;  %v4347_v21 = vld [vmem:[%s6527_s1 + $0x18] sm:$0x3f]  ;;  %vm866_vm1 = vcmask 523264  }
  0x20   : > { %s6544_s21 = smov (!%p500_p0, %s5482_s21), 1  ;;  %v4986_v16 = vld [vmem:[%s6528_s2 + $0x130] ss:$8 sps:$4 sm:$0xff]   ;;  %v4988_v17 = vld [vmem:[%s6528_s2 + $0x134] ss:$8 sps:$4 sm:$0xff]   ;;  %vm2527_vm2 = vcmask 1045504  }
  0x21   : > { %s4961_s29 = smul.u32 96, %s6544_s21  ;;  %v4991_v18 = vld [vmem:[%s6528_s2 + $0x74] ss:$8 sps:$4 sm:$0xff]   ;;  %v4989_v20 = vld [vmem:[%s6528_s2 + $0x70] ss:$8 sps:$4 sm:$0xff]   ;;  %vm2523_vm7 = vcmask 113664   ;;  %s507_s16 = scalar_lea.vmem %s6541_s15, %s6544_s21 }
  0x22   : > { %v4994_v22 = vld [vmem:[%s6528_s2 + $0x124] ss:$8 sps:$4 sm:$0xff]   ;;  %v4992_v24 = vld [vmem:[%s6528_s2 + $0x120] ss:$8 sps:$4 sm:$0xff]   ;;  %v5000_v26 = vld [vmem:[%s6528_s2 + $0x114] ss:$8 sps:$4 sm:$0xff]  }
  0x23   : > { %s5514_s17 = scalar_lea.vmem %s6526_s0, %s4961_s29  ;;  %v4997_v23 = vld [vmem:[%s6528_s2 + $0x64] ss:$8 sps:$4 sm:$0xff]   ;;  %v4995_v25 = vld [vmem:[%s6528_s2 + $0x60] ss:$8 sps:$4 sm:$0xff]   ;;  %v5003_v27 = vld [vmem:[%s6528_s2 + $0x54] ss:$8 sps:$4 sm:$0xff]  }
  0x24   : > { %v5517_v2 = vld [vmem:[%s5514_s17 + $0x58] sm:$0xff]  ;;  %v519_v3 = vld [vmem:[%s5514_s17 + $0x50] sm:$0xff]  ;;  %v518_v4 = vld [vmem:[%s5514_s17 + $0x48] sm:$0xff]  ;;  %vm2826_vm8 = vcmask 785408   ;;  %vm5392_vm9 = vmmov 0   ;;  %vm3772_vm11 = vcmask 654336  }
  0x25   : > { %550 = vmatprep.subr.mxu0 %v5517_v2  ;;  %662 = vmatprep.subr.mxu1 %v5517_v2  ;;  %v517_v5 = vld [vmem:[%s5514_s17 + $0x40] sm:$0xff]  ;;  %v516_v6 = vld [vmem:[%s5514_s17 + $0x38] sm:$0xff]  ;;  %v515_v7 = vld [vmem:[%s5514_s17 + $0x30] sm:$0xff]  ;;  %vm4210_vm14 = vcmask 130048  }
  0x26   : > { %551 = vmatpush1.msra.mxu0 %v519_v3  ;;  %663 = vmatpush1.msra.mxu1 %v519_v3  ;;  %v514_v8 = vld [vmem:[%s5514_s17 + $0x28] sm:$0xff]  ;;  %v513_v9 = vld [vmem:[%s5514_s17 + $0x20] sm:$0xff]  ;;  %v512_v10 = vld [vmem:[%s5514_s17 + $0x18] sm:$0xff] }
  0x27   : > { %552 = vmatprep.subr.mxu0 %v518_v4  ;;  %664 = vmatprep.subr.mxu1 %v518_v4  ;;  %v511_v11 = vld [vmem:[%s5514_s17 + $0x10] sm:$0xff]  ;;  %v510_v12 = vld [vmem:[%s5514_s17 + $0x8] sm:$0xff]  ;;  %v509_v13 = vld [vmem:[%s5514_s17] sm:$0xff] }
  0x28   : > { %553 = vmatpush1.msra.mxu0 %v517_v5  ;;  %665 = vmatpush1.msra.mxu1 %v517_v5  ;;  %v4998_v28 = vld [vmem:[%s6528_s2 + $0x110] ss:$8 sps:$4 sm:$0xff]   ;;  %v5006_v30 = vld [vmem:[%s6528_s2 + $0x104] ss:$8 sps:$4 sm:$0xff]   ;;  %v5004_v32 = vld [vmem:[%s6528_s2 + $0x100] ss:$8 sps:$4 sm:$0xff]  }
  0x29   : > { %554 = vmatprep.subr.mxu0 %v516_v6  ;;  %666 = vmatprep.subr.mxu1 %v516_v6  ;;  %v5001_v29 = vld [vmem:[%s6528_s2 + $0x50] ss:$8 sps:$4 sm:$0xff]   ;;  %v5009_v31 = vld [vmem:[%s6528_s2 + $0x44] ss:$8 sps:$4 sm:$0xff]   ;;  %v5007_v33 = vld [vmem:[%s6528_s2 + $0x40] ss:$8 sps:$4 sm:$0xff]  }
  0x2a   : > { %555 = vmatpush1.msra.mxu0 %v515_v7  ;;  %667 = vmatpush1.msra.mxu1 %v515_v7  ;;  %v5012_v34 = vld [vmem:[%s6528_s2 + $0xf4] ss:$8 sps:$4 sm:$0xff]   ;;  %v5010_v36 = vld [vmem:[%s6528_s2 + $0xf0] ss:$8 sps:$4 sm:$0xff]   ;;  %v5018_v38 = vld [vmem:[%s6528_s2 + $0xe4] ss:$8 sps:$4 sm:$0xff]  }
  0x2b   : > { %556 = vmatprep.subr.mxu0 %v514_v8  ;;  %668 = vmatprep.subr.mxu1 %v514_v8  ;;  %v5015_v35 = vld [vmem:[%s6528_s2 + $0x34] ss:$8 sps:$4 sm:$0xff]   ;;  %v5013_v37 = vld [vmem:[%s6528_s2 + $0x30] ss:$8 sps:$4 sm:$0xff]   ;;  %v5021_v39 = vld [vmem:[%s6528_s2 + $0x24] ss:$8 sps:$4 sm:$0xff]  }
  0x2c   : > { %557 = vmatpush1.msra.mxu0 %v513_v9  ;;  %669 = vmatpush1.msra.mxu1 %v513_v9  ;;  %v5016_v40 = vld [vmem:[%s6528_s2 + $0xe0] ss:$8 sps:$4 sm:$0xff]   ;;  %v5024_v42 = vld [vmem:[%s6528_s2 + $0xd4] ss:$8 sps:$4 sm:$0xff]   ;;  %v5022_v44 = vld [vmem:[%s6528_s2 + $0xd0] ss:$8 sps:$4 sm:$0xff]  }
  0x2d   : > { %558 = vmatprep.subr.mxu0 %v512_v10  ;;  %670 = vmatprep.subr.mxu1 %v512_v10  ;;  %v5019_v41 = vld [vmem:[%s6528_s2 + $0x20] ss:$8 sps:$4 sm:$0xff]   ;;  %v5027_v43 = vld [vmem:[%s6528_s2 + $0x14] ss:$8 sps:$4 sm:$0xff]   ;;  %v5025_v45 = vld [vmem:[%s6528_s2 + $0x10] ss:$8 sps:$4 sm:$0xff]  }
  0x2e   : > { %559 = vmatpush1.msra.mxu0 %v511_v11  ;;  %671 = vmatpush1.msra.mxu1 %v511_v11  ;;  %v5030_v46 = vld [vmem:[%s6528_s2 + $0xc4] ss:$8 sps:$4 sm:$0xff]   ;;  %v5028_v48 = vld [vmem:[%s6528_s2 + $0xc0] ss:$8 sps:$4 sm:$0xff]   ;;  %v5036_v50 = vld [vmem:[%s6528_s2 + $0x174] ss:$8 sps:$4 sm:$0xff]  }
  0x2f   : > { %560 = vmatprep.subr.mxu0 %v510_v12  ;;  %672 = vmatprep.subr.mxu1 %v510_v12  ;;  %v5033_v47 = vld [vmem:[%s6528_s2 + $0x4] ss:$8 sps:$4 sm:$0xff]   ;;  %v5031_v49 = vld [vmem:[%s6528_s2] ss:$8 sps:$4 sm:$0xff]   ;;  %v5039_v51 = vld [vmem:[%s6528_s2 + $0xb4] ss:$8 sps:$4 sm:$0xff]  }
  0x30   : > { %561 = vmatpush1.msra.mxu0 %v509_v13  ;;  %673 = vmatpush1.msra.mxu1 %v509_v13  ;;  %v5034_v52 = vld [vmem:[%s6528_s2 + $0x170] ss:$8 sps:$4 sm:$0xff]   ;;  %v5042_v54 = vld [vmem:[%s6528_s2 + $0x164] ss:$8 sps:$4 sm:$0xff]   ;;  %v5040_v56 = vld [vmem:[%s6528_s2 + $0x160] ss:$8 sps:$4 sm:$0xff]  }
  0x31   : > { %4344 = vmatmul.mubr.msk.f32.vlgmr.msra.gmra.mxu0 %vm523_vm0, %v521_v14  ;;  %4348 = vmatmul.mubr.msk.f32.vlgmr.msra.gmra.mxu1 %vm523_vm0, %v4346_v15  ;;  %v5037_v53 = vld [vmem:[%s6528_s2 + $0xb0] ss:$8 sps:$4 sm:$0xff]   ;;  %v5045_v55 = vld [vmem:[%s6528_s2 + $0xa4] ss:$8 sps:$4 sm:$0xff]   ;;  %v5043_v57 = vld [vmem:[%s6528_s2 + $0xa0] ss:$8 sps:$4 sm:$0xff]  }
  0x32   : > { %600 = vmatprep.mubr.f32.mxu0 %v5390_v1  ;;  %712 = vmatprep.mubr.f32.mxu1 %v5390_v1  ;;  %v5048_v58 = vld [vmem:[%s6528_s2 + $0x154] ss:$8 sps:$4 sm:$0xff]   ;;  %v5046_v59 = vld [vmem:[%s6528_s2 + $0x150] ss:$8 sps:$4 sm:$0xff]   ;;  %v5054_v62 = vld [vmem:[%s6528_s2 + $0x144] ss:$8 sps:$4 sm:$0xff]  }
  0x33   : > { %870 = vmatprep.subr.bf16.mxu0 %v4988_v17  ;;  %1036 = vmatprep.subr.bf16.mxu1 %v4991_v18  ;;  %v5051_v60 = vld [vmem:[%s6528_s2 + $0x94] ss:$8 sps:$4 sm:$0xff]   ;;  %v5049_v61 = vld [vmem:[%s6528_s2 + $0x90] ss:$8 sps:$4 sm:$0xff]   ;;  %v5052_v63 = vld [vmem:[%s6528_s2 + $0x140] ss:$8 sps:$4 sm:$0xff]  }
  0x34   : > { %871 = vmatpush1.bf16.msra.mxu0 %v4986_v16  ;;  %1037 = vmatpush1.bf16.msra.mxu1 %v4989_v20  ;;  %v5057_v0 = vld [vmem:[%s6528_s2 + $0x84] ss:$8 sps:$4 sm:$0xff]   ;;  %v5055_v3 = vld [vmem:[%s6528_s2 + $0x80] ss:$8 sps:$4 sm:$0xff]   ;;  %v5060_v4 = vld [vmem:[%s6528_s2 + $0x1f4] ss:$8 sps:$4 sm:$0xff]  }
  0x35   : > { %4345 = vmatmul.mubr.msk.f32.gmra.mxu0 %vm523_vm0, %v522_v19  ;;  %4349 = vmatmul.mubr.msk.f32.gmra.mxu1 %vm523_vm0, %v4347_v21  ;;  %v5058_v16 = vld [vmem:[%s6528_s2 + $0x1f0] ss:$8 sps:$4 sm:$0xff]   ;;  %v5063_v17 = vld [vmem:[%s6528_s2 + $0x1e4] ss:$8 sps:$4 sm:$0xff]   ;;  %v5061_v20 = vld [vmem:[%s6528_s2 + $0x1e0] ss:$8 sps:$4 sm:$0xff]  }
  0x36   : > { %872 = vmatprep.subr.bf16.mxu0 %v4994_v22  ;;  %1038 = vmatprep.subr.bf16.mxu1 %v4997_v23  ;;  %v5707_v18 = vld [vmem:[%s5514_s17 + $0x50] sm:$0xff]  ;;  %v5712_v19 = vld [vmem:[%s5514_s17 + $0x48] sm:$0xff]  ;;  %v5719_v21 = vld [vmem:[%s5514_s17 + $0x40] sm:$0xff] }
  0x37   : > { %v5066_v22 = vld [vmem:[%s6528_s2 + $0x1d4] ss:$8 sps:$4 sm:$0xff]  }
  0x38   : > { %873 = vmatpush1.bf16.msra.mxu0 %v4992_v24  ;;  %1039 = vmatpush1.bf16.msra.mxu1 %v4995_v25  ;;  %v5726_v23 = vld [vmem:[%s5514_s17 + $0x38] sm:$0xff]  ;;  %v5730_v24 = vld [vmem:[%s5514_s17 + $0x30] sm:$0xff]  ;;  %v5734_v25 = vld [vmem:[%s5514_s17 + $0x28] sm:$0xff] }
  0x39   : > { %874 = vmatprep.subr.bf16.mxu0 %v5000_v26  ;;  %1040 = vmatprep.subr.bf16.mxu1 %v5003_v27  ;;  %v5064_v26 = vld [vmem:[%s6528_s2 + $0x1d0] ss:$8 sps:$4 sm:$0xff]   ;;  %v5741_v27 = vld [vmem:[%s5514_s17 + $0x20] sm:$0xff] }
  0x3c   : > { %875 = vmatpush1.bf16.msra.mxu0 %v4998_v28  ;;  %1041 = vmatpush1.bf16.msra.mxu1 %v5001_v29  ;;  %v5069_v28 = vld [vmem:[%s6528_s2 + $0x1c4] ss:$8 sps:$4 sm:$0xff]   ;;  %v5748_v29 = vld [vmem:[%s5514_s17 + $0x18] sm:$0xff] }
  0x3d   : > { %876 = vmatprep.subr.bf16.mxu0 %v5006_v30  ;;  %1042 = vmatprep.subr.bf16.mxu1 %v5009_v31  ;;  %v5752_v30 = vld [vmem:[%s5514_s17 + $0x10] sm:$0xff]  ;;  %v4424_v31 = vld [vmem:[%s6527_s1 + $0x20] sm:$0xff] }
  0x40   : > { %877 = vmatpush1.bf16.msra.mxu0 %v5004_v32  ;;  %1043 = vmatpush1.bf16.msra.mxu1 %v5007_v33  ;;  %v5759_v32 = vld [vmem:[%s5514_s17 + $0x8] sm:$0xff] }
  0x41   : > { %878 = vmatprep.subr.bf16.mxu0 %v5012_v34  ;;  %1044 = vmatprep.subr.bf16.mxu1 %v5015_v35  ;;  %v5067_v33 = vld [vmem:[%s6528_s2 + $0x1c0] ss:$8 sps:$4 sm:$0xff]   ;;  %v5075_v35 = vld [vmem:[%s6528_s2 + $0x1b4] ss:$8 sps:$4 sm:$0xff]  }
  0x42   : > { %v5766_v34 = vld [vmem:[%s5514_s17] sm:$0xff] }
  0x44   : > { %879 = vmatpush1.bf16.msra.mxu0 %v5010_v36  ;;  %1045 = vmatpush1.bf16.msra.mxu1 %v5013_v37  ;;  %v5774_v36 = vld [vmem:[%s5514_s17 + $0x58] sm:$0xff]  ;;  %v4425_v37 = vld [vmem:[%s6527_s1 + $0x28] sm:$0x3f] }
  0x45   : > { %880 = vmatprep.subr.bf16.mxu0 %v5018_v38  ;;  %1046 = vmatprep.subr.bf16.mxu1 %v5021_v39  ;;  %v5073_v38 = vld [vmem:[%s6528_s2 + $0x1b0] ss:$8 sps:$4 sm:$0xff]   ;;  %v5081_v39 = vld [vmem:[%s6528_s2 + $0x1a4] ss:$8 sps:$4 sm:$0xff]  }
  0x48   : > { %881 = vmatpush1.bf16.msra.mxu0 %v5016_v40  ;;  %1047 = vmatpush1.bf16.msra.mxu1 %v5019_v41  ;;  %v5079_v40 = vld [vmem:[%s6528_s2 + $0x1a0] ss:$8 sps:$4 sm:$0xff]   ;;  %v5087_v41 = vld [vmem:[%s6528_s2 + $0x194] ss:$8 sps:$4 sm:$0xff]  }
  0x49   : > { %882 = vmatprep.subr.bf16.mxu0 %v5024_v42  ;;  %1048 = vmatprep.subr.bf16.mxu1 %v5027_v43  ;;  %v5072_v42 = vld [vmem:[%s6528_s2 + $0x2b4] ss:$8 sps:$4 sm:$0xff]  }
  0x4a   : > { %v4477_v43 = vld [vmem:[%s6527_s1 + $0x30] sm:$0xff] }
  0x4c   : > { %883 = vmatpush1.bf16.msra.mxu0 %v5022_v44  ;;  %1049 = vmatpush1.bf16.msra.mxu1 %v5025_v45  ;;  %v5070_v44 = vld [vmem:[%s6528_s2 + $0x2b0] ss:$8 sps:$4 sm:$0xff]   ;;  %v5078_v45 = vld [vmem:[%s6528_s2 + $0x2a4] ss:$8 sps:$4 sm:$0xff]  }
  0x4d   : > { %884 = vmatprep.subr.bf16.mxu0 %v5030_v46  ;;  %1050 = vmatprep.subr.bf16.mxu1 %v5033_v47  ;;  %v5085_v46 = vld [vmem:[%s6528_s2 + $0x190] ss:$8 sps:$4 sm:$0xff]  }
  0x4e   : > { %v4478_v47 = vld [vmem:[%s6527_s1 + $0x38] sm:$0x3f] }
  0x50   : > { %885 = vmatpush1.bf16.msra.mxu0 %v5028_v48  ;;  %1051 = vmatpush1.bf16.msra.mxu1 %v5031_v49  ;;  %v5076_v48 = vld [vmem:[%s6528_s2 + $0x2a0] ss:$8 sps:$4 sm:$0xff]   ;;  %v5084_v49 = vld [vmem:[%s6528_s2 + $0x294] ss:$8 sps:$4 sm:$0xff]  }
  0x51   : > { %894 = vmatprep.subr.bf16.mxu0 %v5036_v50  ;;  %1060 = vmatprep.subr.bf16.mxu1 %v5039_v51  ;;  %v5082_v50 = vld [vmem:[%s6528_s2 + $0x290] ss:$8 sps:$4 sm:$0xff]   ;;  %v5090_v51 = vld [vmem:[%s6528_s2 + $0x284] ss:$8 sps:$4 sm:$0xff]  }
  0x54   : > { %895 = vmatpush2.bf16.msra.mxu0 %v5034_v52  ;;  %1061 = vmatpush2.bf16.msra.mxu1 %v5037_v53  ;;  %v5088_v52 = vld [vmem:[%s6528_s2 + $0x280] ss:$8 sps:$4 sm:$0xff]   ;;  %v5093_v53 = vld [vmem:[%s6528_s2 + $0x184] ss:$8 sps:$4 sm:$0xff]  }
  0x55   : > { %896 = vmatprep.subr.bf16.mxu0 %v5042_v54  ;;  %1062 = vmatprep.subr.bf16.mxu1 %v5045_v55  ;;  %v5096_v54 = vld [vmem:[%s6528_s2 + $0x274] ss:$8 sps:$4 sm:$0xff]   ;;  %v5091_v55 = vld [vmem:[%s6528_s2 + $0x180] ss:$8 sps:$4 sm:$0xff]  }
  0x58   : > { %897 = vmatpush2.bf16.msra.mxu0 %v5040_v56  ;;  %1063 = vmatpush2.bf16.msra.mxu1 %v5043_v57  ;;  %v5094_v56 = vld [vmem:[%s6528_s2 + $0x270] ss:$8 sps:$4 sm:$0xff]   ;;  %v5099_v57 = vld [vmem:[%s6528_s2 + $0x234] ss:$8 sps:$4 sm:$0xff]  }
  0x59   : > { %898 = vmatprep.subr.bf16.mxu0 %v5048_v58  ;;  %1064 = vmatprep.subr.bf16.mxu1 %v5051_v60  ;;  %v5102_v58 = vld [vmem:[%s6528_s2 + $0x264] ss:$8 sps:$4 sm:$0xff]   ;;  %v5100_v60 = vld [vmem:[%s6528_s2 + $0x260] ss:$8 sps:$4 sm:$0xff]  }
  0x5c   : > { %899 = vmatpush2.bf16.msra.mxu0 %v5046_v59  ;;  %1065 = vmatpush2.bf16.msra.mxu1 %v5049_v61  ;;  %v5097_v59 = vld [vmem:[%s6528_s2 + $0x230] ss:$8 sps:$4 sm:$0xff]   ;;  %v5103_v61 = vld [vmem:[%s6528_s2 + $0x220] ss:$8 sps:$4 sm:$0xff]  }
  0x5d   : > { %900 = vmatprep.subr.bf16.mxu0 %v5054_v62  ;;  %1066 = vmatprep.subr.bf16.mxu1 %v5057_v0  ;;  %v5105_v62 = vld [vmem:[%s6528_s2 + $0x224] ss:$8 sps:$4 sm:$0xff]   ;;  %v5108_v0 = vld [vmem:[%s6528_s2 + $0x254] ss:$8 sps:$4 sm:$0xff]  }
  0x60   : > { %901 = vmatpush2.bf16.msra.mxu0 %v5052_v63  ;;  %1067 = vmatpush2.bf16.msra.mxu1 %v5055_v3  ;;  %v5106_v63 = vld [vmem:[%s6528_s2 + $0x250] ss:$8 sps:$4 sm:$0xff]   ;;  %v5111_v3 = vld [vmem:[%s6528_s2 + $0x214] ss:$8 sps:$4 sm:$0xff]  }
  0x61   : > { %1108 = vmatprep.subr.mxu0 %v5517_v2  ;;  %1315 = vmatprep.subr.bf16.mxu1 %v5060_v4  ;;  %v5114_v4 = vld [vmem:[%s6528_s2 + $0x244] ss:$8 sps:$4 sm:$0xff]  }
  0xf1   : > { %v596_v5 = vpop.f32.mrf.mxu0  ;;  %v708_v6 = vpop.f32.mrf.mxu1 }
  0xf3   : > { %v598_v7 = vpop.f32.mrf.mxu0  ;;  %v710_v8 = vpop.f32.mrf.mxu1 }
  0xf5   : > { %v602_v9 = vpop.f32.mrf.mxu0  ;;  %v714_v10 = vpop.f32.mrf.mxu1 }
  0xf6   : > { %v607_v11 = vpack.c.bf16 %v602_v9, %v596_v5  ;;  %v719_v15 = vpack.c.bf16 %v714_v10, %v708_v6  ;;  %v5109_v5 = vld [vmem:[%s6528_s2 + $0x210] ss:$8 sps:$4 sm:$0xff]   ;;  %v5112_v6 = vld [vmem:[%s6528_s2 + $0x240] ss:$8 sps:$4 sm:$0xff]  }
  0xf7   : > { %v604_v12 = vpop.f32.mrf.mxu0  ;;  %v716_v13 = vpop.f32.mrf.mxu1  ;;  %v5115_v9 = vld [vmem:[%s6528_s2 + $0x200] ss:$8 sps:$4 sm:$0xff]   ;;  %v5118_v10 = vld [vmem:[%s6528_s2 + $0x2f0] ss:$8 sps:$4 sm:$0xff]  }
  0xf8   : > { %v608_v14 = vpack.c.bf16 %v604_v12, %v598_v7  ;;  %v720_v2 = vpack.c.bf16 %v716_v13, %v710_v8  ;;  %v5117_v7 = vld [vmem:[%s6528_s2 + $0x204] ss:$8 sps:$4 sm:$0xff]   ;;  %v5120_v8 = vld [vmem:[%s6528_s2 + $0x2f4] ss:$8 sps:$4 sm:$0xff]   ;;  %v5121_v12 = vld [vmem:[%s6528_s2 + $0x2e0] ss:$8 sps:$4 sm:$0xff]  }
  0xf9   : > { %v5126_v13 = vld [vmem:[%s6528_s2 + $0x2d4] ss:$8 sps:$4 sm:$0xff]  }
  0xfa   : > { %4398 = vmatprep.mubr.msk.bf16.mxu0 %vm866_vm1, %v720_v2  ;;  %4423 = vmatprep.mubr.msk.bf16.mxu1 %vm866_vm1, %v608_v14  ;;  %v5124_v14 = vld [vmem:[%s6528_s2 + $0x2d0] ss:$8 sps:$4 sm:$0xff]   ;;  %v5129_v2 = vld [vmem:[%s6528_s2 + $0x2c4] ss:$8 sps:$4 sm:$0xff]  }
  0xfb   : > { %903 = vmatmul.mubr.bf16.vlgmr.msra.gmra.mxu0 %v719_v15  ;;  %1069 = vmatmul.mubr.bf16.vlgmr.msra.gmra.mxu1 %v607_v11  ;;  %v5123_v11 = vld [vmem:[%s6528_s2 + $0x2e4] ss:$8 sps:$4 sm:$0xff]   ;;  %v5127_v15 = vld [vmem:[%s6528_s2 + $0x2c0] ss:$8 sps:$4 sm:$0xff]  }
  0xfc   : > { %1109 = vmatpush1.msra.mxu0 %v5707_v18  ;;  %1152 = vmatprep.mubr.f32.mxu0 %v5390_v1 }
  0xfd   : > { %1110 = vmatprep.subr.mxu0 %v5712_v19  ;;  %1316 = vmatpush1.bf16.msra.mxu1 %v5058_v16 }
  0xfe   : > { %1111 = vmatpush1.msra.mxu0 %v5719_v21  ;;  %1317 = vmatprep.subr.bf16.mxu1 %v5063_v17 }
  0xff   : > { %1112 = vmatprep.subr.mxu0 %v5726_v23 }
 0x100   : > { %1113 = vmatpush1.msra.mxu0 %v5730_v24 }
 0x101   : > { %1114 = vmatprep.subr.mxu0 %v5734_v25  ;;  %1318 = vmatpush1.bf16.msra.mxu1 %v5061_v20 }
 0x102   : > { %1115 = vmatpush1.msra.mxu0 %v5741_v27  ;;  %1319 = vmatprep.subr.bf16.mxu1 %v5066_v22 }
 0x103   : > { %1116 = vmatprep.subr.mxu0 %v5748_v29 }
 0x104   : > { %1117 = vmatpush1.msra.mxu0 %v5752_v30 }
 0x105   : > { %1118 = vmatprep.subr.mxu0 %v5759_v32  ;;  %1320 = vmatpush1.bf16.msra.mxu1 %v5064_v26 }
 0x106   : > { %1119 = vmatpush1.msra.mxu0 %v5766_v34  ;;  %1321 = vmatprep.subr.bf16.mxu1 %v5069_v28 }
 0x107   : > { %4426 = vmatmul.mubr.msk.f32.vlgmr.msra.gmra.mxu0 %vm523_vm0, %v4424_v31  ;;  %1391 = vmatprep.subr.mxu0 %v5774_v36 }
 0x108   : > { %1392 = vmatpush1.msra.mxu0 %v5707_v18  ;;  %1158 = vmatprep.mubr.f32.mxu0 %v5390_v1 }
 0x109   : > { %1393 = vmatprep.subr.mxu0 %v5712_v19  ;;  %1322 = vmatpush1.bf16.msra.mxu1 %v5067_v33 }
 0x10a   : > { %1394 = vmatpush1.msra.mxu0 %v5719_v21  ;;  %1323 = vmatprep.subr.bf16.mxu1 %v5075_v35 }
 0x10b   : > { %4427 = vmatmul.mubr.msk.f32.gmra.mxu0 %vm523_vm0, %v4425_v37  ;;  %1395 = vmatprep.subr.mxu0 %v5726_v23 }
 0x10c   : > { %1396 = vmatpush1.msra.mxu0 %v5730_v24  ;;  %1435 = vmatprep.mubr.f32.mxu0 %v5390_v1 }
 0x10d   : > { %1397 = vmatprep.subr.mxu0 %v5734_v25  ;;  %1324 = vmatpush1.bf16.msra.mxu1 %v5073_v38 }
 0x10e   : > { %1398 = vmatpush1.msra.mxu0 %v5741_v27  ;;  %1325 = vmatprep.subr.bf16.mxu1 %v5081_v39 }
 0x10f   : > { %1399 = vmatprep.subr.mxu0 %v5748_v29 }
 0x110   : > { %1400 = vmatpush1.msra.mxu0 %v5752_v30 }
 0x111   : > { %1401 = vmatprep.subr.mxu0 %v5759_v32  ;;  %1326 = vmatpush1.bf16.msra.mxu1 %v5079_v40 }
 0x112   : > { %1402 = vmatpush1.msra.mxu0 %v5766_v34  ;;  %1327 = vmatprep.subr.bf16.mxu1 %v5087_v41 }
 0x113   : > { %4479 = vmatmul.mubr.msk.f32.vlgmr.msra.gmra.mxu0 %vm523_vm0, %v4477_v43  ;;  %1598 = vmatprep.subr.bf16.mxu0 %v5072_v42 }
 0x114   : > { %1441 = vmatprep.mubr.f32.mxu0 %v5390_v1  ;;  %1599 = vmatpush1.bf16.msra.mxu0 %v5070_v44 }
 0x115   : > { %1600 = vmatprep.subr.bf16.mxu0 %v5078_v45  ;;  %1328 = vmatpush1.bf16.msra.mxu1 %v5085_v46 }
 0x116   : > { %1329 = vmatprep.subr.bf16.mxu1 %v5093_v53  ;;  %v5130_v53 = vld [vmem:[%s6528_s2 + $0x370] ss:$8 sps:$4 sm:$0xff]  }
 0x117   : > { %4480 = vmatmul.mubr.msk.f32.gmra.mxu0 %vm523_vm0, %v4478_v47 }
 0x118   : > { %1601 = vmatpush1.bf16.msra.mxu0 %v5076_v48 }
 0x119   : > { %1602 = vmatprep.subr.bf16.mxu0 %v5084_v49  ;;  %1330 = vmatpush1.bf16.msra.mxu1 %v5091_v55  ;;  %v5133_v55 = vld [vmem:[%s6528_s2 + $0x360] ss:$8 sps:$4 sm:$0xff]  }
 0x11a   : > { %1339 = vmatprep.subr.bf16.mxu1 %v5099_v57  ;;  %v5144_v57 = vld [vmem:[%s6528_s2 + $0x434] ss:$8 sps:$4 sm:$0xff]  }
 0x11c   : > { %1603 = vmatpush1.bf16.msra.mxu0 %v5082_v50  ;;  %v4530_v50 = vld [vmem:[%s6527_s1 + $0x40] sm:$0xff] }
 0x11d   : > { %1604 = vmatprep.subr.bf16.mxu0 %v5090_v51  ;;  %1340 = vmatpush2.bf16.msra.mxu1 %v5097_v59  ;;  %v5132_v51 = vld [vmem:[%s6528_s2 + $0x374] ss:$8 sps:$4 sm:$0xff]   ;;  %v5136_v59 = vld [vmem:[%s6528_s2 + $0x350] ss:$8 sps:$4 sm:$0xff]  }
 0x11e   : > { %1341 = vmatprep.subr.bf16.mxu1 %v5105_v62  ;;  %v5150_v62 = vld [vmem:[%s6528_s2 + $0x424] ss:$8 sps:$4 sm:$0xff]  }
 0x120   : > { %1605 = vmatpush1.bf16.msra.mxu0 %v5088_v52  ;;  %v4531_v52 = vld [vmem:[%s6527_s1 + $0x48] sm:$0x3f] }
 0x121   : > { %1606 = vmatprep.subr.bf16.mxu0 %v5096_v54  ;;  %1342 = vmatpush2.bf16.msra.mxu1 %v5103_v61  ;;  %v5135_v54 = vld [vmem:[%s6528_s2 + $0x364] ss:$8 sps:$4 sm:$0xff]   ;;  %v5142_v61 = vld [vmem:[%s6528_s2 + $0x430] ss:$8 sps:$4 sm:$0xff]  }
 0x122   : > { %1343 = vmatprep.subr.bf16.mxu1 %v5111_v3  ;;  %v5147_v3 = vld [vmem:[%s6528_s2 + $0x334] ss:$8 sps:$4 sm:$0xff]  }
 0x124   : > { %1607 = vmatpush1.bf16.msra.mxu0 %v5094_v56  ;;  %v5138_v56 = vld [vmem:[%s6528_s2 + $0x354] ss:$8 sps:$4 sm:$0xff]  }
 0x125   : > { %1608 = vmatprep.subr.bf16.mxu0 %v5102_v58  ;;  %1344 = vmatpush2.bf16.msra.mxu1 %v5109_v5  ;;  %v4583_v58 = vld [vmem:[%s6527_s1 + $0x50] sm:$0xff] }
 0x126   : > { %1345 = vmatprep.subr.bf16.mxu1 %v5117_v7  ;;  %v5156_v5 = vld [vmem:[%s6528_s2 + $0x414] ss:$8 sps:$4 sm:$0xff]   ;;  %v5153_v7 = vld [vmem:[%s6528_s2 + $0x324] ss:$8 sps:$4 sm:$0xff]  }
 0x128   : > { %1609 = vmatpush1.bf16.msra.mxu0 %v5100_v60  ;;  %v5141_v60 = vld [vmem:[%s6528_s2 + $0x344] ss:$8 sps:$4 sm:$0xff]  }
 0x129   : > { %1610 = vmatprep.subr.bf16.mxu0 %v5108_v0  ;;  %1346 = vmatpush2.bf16.msra.mxu1 %v5115_v9  ;;  %v5139_v0 = vld [vmem:[%s6528_s2 + $0x340] ss:$8 sps:$4 sm:$0xff]   ;;  %v5162_v9 = vld [vmem:[%s6528_s2 + $0x404] ss:$8 sps:$4 sm:$0xff]  }
 0x12a   : > { %1674 = vmatprep.subr.mxu1 %v5774_v36 }
 0x12c   : > { %1611 = vmatpush1.bf16.msra.mxu0 %v5106_v63  ;;  %v4584_v63 = vld [vmem:[%s6527_s1 + $0x58] sm:$0x3f] }
 0x12d   : > { %1612 = vmatprep.subr.bf16.mxu0 %v5114_v4  ;;  %v5148_v4 = vld [vmem:[%s6528_s2 + $0x420] ss:$8 sps:$4 sm:$0xff]  }
 0x130   : > { %1613 = vmatpush1.bf16.msra.mxu0 %v5112_v6  ;;  %v5145_v6 = vld [vmem:[%s6528_s2 + $0x330] ss:$8 sps:$4 sm:$0xff]  }
 0x131   : > { %1622 = vmatprep.subr.bf16.mxu0 %v5120_v8  ;;  %v5154_v8 = vld [vmem:[%s6528_s2 + $0x410] ss:$8 sps:$4 sm:$0xff]  }
 0x134   : > { %1623 = vmatpush2.bf16.msra.mxu0 %v5118_v10  ;;  %v5151_v10 = vld [vmem:[%s6528_s2 + $0x320] ss:$8 sps:$4 sm:$0xff]  }
 0x135   : > { %1624 = vmatprep.subr.bf16.mxu0 %v5123_v11  ;;  %v5159_v11 = vld [vmem:[%s6528_s2 + $0x314] ss:$8 sps:$4 sm:$0xff]  }
 0x138   : > { %1625 = vmatpush2.bf16.msra.mxu0 %v5121_v12  ;;  %v5160_v12 = vld [vmem:[%s6528_s2 + $0x400] ss:$8 sps:$4 sm:$0xff]  }
 0x139   : > { %1626 = vmatprep.subr.bf16.mxu0 %v5126_v13  ;;  %v5157_v13 = vld [vmem:[%s6528_s2 + $0x310] ss:$8 sps:$4 sm:$0xff]  }
 0x13c   : > { %1627 = vmatpush2.bf16.msra.mxu0 %v5124_v14  ;;  %v5165_v14 = vld [vmem:[%s6528_s2 + $0x304] ss:$8 sps:$4 sm:$0xff]  }
 0x13d   : > { %1628 = vmatprep.subr.bf16.mxu0 %v5129_v2  ;;  %v5163_v2 = vld [vmem:[%s6528_s2 + $0x300] ss:$8 sps:$4 sm:$0xff]  }
 0x140   : > { %1629 = vmatpush2.bf16.msra.mxu0 %v5127_v15  ;;  %v5168_v15 = vld [vmem:[%s6528_s2 + $0x3f4] ss:$8 sps:$4 sm:$0xff]  }
 0x141   : > { %1957 = vmatprep.subr.mxu0 %v5774_v36 }
 0x1bb   : > { %v904_v16 = vpop.f32.mrf.mxu0  ;;  %v1070_v17 = vpop.f32.mrf.mxu1 }
 0x1bc   : > { %v5922_v20 = vadd.f32 %v1070_v17, %v904_v16  ;;  %v5166_v16 = vld [vmem:[%s6528_s2 + $0x3f0] ss:$8 sps:$4 sm:$0xff]   ;;  %v5171_v17 = vld [vmem:[%s6528_s2 + $0x3b4] ss:$8 sps:$4 sm:$0xff]  }
 0x1bd   : > { %v906_v22 = vpop.f32.mrf.mxu0  ;;  %v1072_v26 = vpop.f32.mrf.mxu1 }
 0x1be   : > { %v5924_v28 = vadd.f32 %v1072_v26, %v906_v22  ;;  %v5169_v22 = vld [vmem:[%s6528_s2 + $0x3b0] ss:$8 sps:$4 sm:$0xff]   ;;  %v5174_v26 = vld [vmem:[%s6528_s2 + $0x3e4] ss:$8 sps:$4 sm:$0xff]  }
 0x1bf   : > { %v908_v31 = vpop.f32.mrf.mxu0  ;;  %v1074_v33 = vpop.f32.mrf.mxu1 }
 0x1c0   : > { %v5926_v35 = vadd.f32 %v1074_v33, %v908_v31  ;;  %v5172_v31 = vld [vmem:[%s6528_s2 + $0x3e0] ss:$8 sps:$4 sm:$0xff]  }
 0x1c1   : > { %v5928_v37 = vpop.f32.mrf.mxu0  ;;  %v5175_v33 = vld [vmem:[%s6528_s2 + $0x3a0] ss:$8 sps:$4 sm:$0xff]  }
 0x1c7   : > { %v1154_v38 = vpop.f32.mrf.mxu0 }
 0x1c9   : > { %v1156_v39 = vpop.f32.mrf.mxu0 }
 0x1cb   : > { %v1160_v40 = vpop.f32.mrf.mxu0 }
 0x1cc   : > { %v1165_v43 = vpack.c.bf16 %v1160_v40, %v1154_v38  ;;  %v5177_v38 = vld [vmem:[%s6528_s2 + $0x3a4] ss:$8 sps:$4 sm:$0xff]   ;;  %v5180_v40 = vld [vmem:[%s6528_s2 + $0x3d4] ss:$8 sps:$4 sm:$0xff]  }
 0x1cd   : > { %v1162_v41 = vpop.f32.mrf.mxu0 }
 0x1ce   : > { %v1166_v42 = vpack.c.bf16 %v1162_v41, %v1156_v39  ;;  %v5178_v39 = vld [vmem:[%s6528_s2 + $0x3d0] ss:$8 sps:$4 sm:$0xff]   ;;  %v5183_v41 = vld [vmem:[%s6528_s2 + $0x394] ss:$8 sps:$4 sm:$0xff]  }
 0x1d0   : > { %4476 = vmatprep.mubr.msk.bf16.mxu1 %vm866_vm1, %v1166_v42  ;;  %v5181_v42 = vld [vmem:[%s6528_s2 + $0x390] ss:$8 sps:$4 sm:$0xff]  }
 0x1d1   : > { %1348 = vmatmul.mubr.bf16.vlgmr.msra.gmra.mxu1 %v1165_v43  ;;  %v5186_v43 = vld [vmem:[%s6528_s2 + $0x3c4] ss:$8 sps:$4 sm:$0xff]  }
 0x1d2   : > { %1675 = vmatpush1.msra.mxu1 %v5707_v18  ;;  %1718 = vmatprep.mubr.f32.mxu1 %v5390_v1 }
 0x1d3   : > { %1676 = vmatprep.subr.mxu1 %v5712_v19  ;;  %v1437_v44 = vpop.f32.mrf.mxu0 }
 0x1d4   : > { %1677 = vmatpush1.msra.mxu1 %v5719_v21 }
 0x1d5   : > { %1678 = vmatprep.subr.mxu1 %v5726_v23  ;;  %v1439_v45 = vpop.f32.mrf.mxu0 }
 0x1d6   : > { %1679 = vmatpush1.msra.mxu1 %v5730_v24 }
 0x1d7   : > { %1680 = vmatprep.subr.mxu1 %v5734_v25  ;;  %v1443_v46 = vpop.f32.mrf.mxu0 }
 0x1d8   : > { %1681 = vmatpush1.msra.mxu1 %v5741_v27  ;;  %v1448_v47 = vpack.c.bf16 %v1443_v46, %v1437_v44  ;;  %v5184_v44 = vld [vmem:[%s6528_s2 + $0x3c0] ss:$8 sps:$4 sm:$0xff]  }
 0x1d9   : > { %1682 = vmatprep.subr.mxu1 %v5748_v29  ;;  %v1445_v48 = vpop.f32.mrf.mxu0  ;;  %v5187_v46 = vld [vmem:[%s6528_s2 + $0x380] ss:$8 sps:$4 sm:$0xff]  }
 0x1da   : > { %v1449_v49 = vpack.c.bf16 %v1445_v48, %v1439_v45  ;;  %1683 = vmatpush1.msra.mxu1 %v5752_v30  ;;  %v5189_v45 = vld [vmem:[%s6528_s2 + $0x384] ss:$8 sps:$4 sm:$0xff]   ;;  %v5190_v48 = vld [vmem:[%s6528_s2 + $0x470] ss:$8 sps:$4 sm:$0xff]  }
 0x1db   : > { %1684 = vmatprep.subr.mxu1 %v5759_v32 }
 0x1dc   : > { %1685 = vmatpush1.msra.mxu1 %v5766_v34  ;;  %4529 = vmatprep.mubr.msk.bf16.mxu0 %vm866_vm1, %v1449_v49  ;;  %v5195_v49 = vld [vmem:[%s6528_s2 + $0x464] ss:$8 sps:$4 sm:$0xff]  }
 0x1dd   : > { %4532 = vmatmul.mubr.msk.f32.vlgmr.msra.gmra.mxu1 %vm523_vm0, %v4530_v50  ;;  %1631 = vmatmul.mubr.bf16.vlgmr.msra.gmra.mxu0 %v1448_v47  ;;  %v5192_v47 = vld [vmem:[%s6528_s2 + $0x474] ss:$8 sps:$4 sm:$0xff]   ;;  %v5193_v50 = vld [vmem:[%s6528_s2 + $0x460] ss:$8 sps:$4 sm:$0xff]  }
 0x1de   : > { %1958 = vmatpush1.msra.mxu0 %v5707_v18  ;;  %1724 = vmatprep.mubr.f32.mxu1 %v5390_v1 }
 0x1df   : > { %1959 = vmatprep.subr.mxu0 %v5712_v19  ;;  %2001 = vmatprep.mubr.f32.mxu0 %v5390_v1 }
 0x1e0   : > { %1960 = vmatpush1.msra.mxu0 %v5719_v21  ;;  %1881 = vmatprep.subr.bf16.mxu1 %v5132_v51  ;;  %v5198_v51 = vld [vmem:[%s6528_s2 + $0x454] ss:$8 sps:$4 sm:$0xff]  }
 0x1e1   : > { %4533 = vmatmul.mubr.msk.f32.gmra.mxu1 %vm523_vm0, %v4531_v52  ;;  %1961 = vmatprep.subr.mxu0 %v5726_v23  ;;  %v5196_v52 = vld [vmem:[%s6528_s2 + $0x450] ss:$8 sps:$4 sm:$0xff]  }
 0x1e2   : > { %1962 = vmatpush1.msra.mxu0 %v5730_v24  ;;  %1882 = vmatpush1.bf16.msra.mxu1 %v5130_v53  ;;  %v5199_v53 = vld [vmem:[%s6528_s2 + $0x440] ss:$8 sps:$4 sm:$0xff]  }
 0x1e3   : > { %1963 = vmatprep.subr.mxu0 %v5734_v25  ;;  %1883 = vmatprep.subr.bf16.mxu1 %v5135_v54  ;;  %v1076_v54 = vpop.f32.mrf.mxu1 }
 0x1e4   : > { %1964 = vmatpush1.msra.mxu0 %v5741_v27 }
 0x1e5   : > { %1965 = vmatprep.subr.mxu0 %v5748_v29 }
 0x1e6   : > { %1966 = vmatpush1.msra.mxu0 %v5752_v30  ;;  %1884 = vmatpush1.bf16.msra.mxu1 %v5133_v55 }
 0x1e7   : > { %1967 = vmatprep.subr.mxu0 %v5759_v32  ;;  %1885 = vmatprep.subr.bf16.mxu1 %v5138_v56 }
 0x1e8   : > { %1968 = vmatpush1.msra.mxu0 %v5766_v34 }
 0x1e9   : > { %4585 = vmatmul.mubr.msk.f32.vlgmr.msra.gmra.mxu0 %vm523_vm0, %v4583_v58  ;;  %2164 = vmatprep.subr.bf16.mxu0 %v5144_v57 }
 0x1ea   : > { %2007 = vmatprep.mubr.f32.mxu0 %v5390_v1  ;;  %1886 = vmatpush1.bf16.msra.mxu1 %v5136_v59 }
 0x1eb   : > { %1887 = vmatprep.subr.bf16.mxu1 %v5141_v60  ;;  %2165 = vmatpush1.bf16.msra.mxu0 %v5142_v61  ;;  %v1077_v60 = vadd.f32 %v1076_v54, %v5928_v37 }
 0x1ec   : > { %2166 = vmatprep.subr.bf16.mxu0 %v5150_v62 }
 0x1ed   : > { %4586 = vmatmul.mubr.msk.f32.gmra.mxu0 %vm523_vm0, %v4584_v63 }
 0x1ee   : > { %1888 = vmatpush1.bf16.msra.mxu1 %v5139_v0 }
 0x1ef   : > { %1889 = vmatprep.subr.bf16.mxu1 %v5147_v3  ;;  %2167 = vmatpush1.bf16.msra.mxu0 %v5148_v4 }
 0x1f0   : > { %2168 = vmatprep.subr.bf16.mxu0 %v5156_v5 }
 0x1f2   : > { %1890 = vmatpush1.bf16.msra.mxu1 %v5145_v6 }
 0x1f3   : > { %1891 = vmatprep.subr.bf16.mxu1 %v5153_v7  ;;  %2169 = vmatpush1.bf16.msra.mxu0 %v5154_v8 }
 0x1f4   : > { %2170 = vmatprep.subr.bf16.mxu0 %v5162_v9 }
 0x1f6   : > { %1892 = vmatpush1.bf16.msra.mxu1 %v5151_v10 }
 0x1f7   : > { %1893 = vmatprep.subr.bf16.mxu1 %v5159_v11  ;;  %2171 = vmatpush1.bf16.msra.mxu0 %v5160_v12 }
 0x1f8   : > { %2172 = vmatprep.subr.bf16.mxu0 %v5168_v15 }
 0x1fa   : > { %1894 = vmatpush1.bf16.msra.mxu1 %v5157_v13 }
 0x1fb   : > { %1895 = vmatprep.subr.bf16.mxu1 %v5165_v14  ;;  %2173 = vmatpush1.bf16.msra.mxu0 %v5166_v16  ;;  %v5216_v16 = vld [vmem:[%s6528_s2 + $0x4b4] ss:$8 sps:$4 sm:$0xff]  }
 0x1fc   : > { %2174 = vmatprep.subr.bf16.mxu0 %v5174_v26  ;;  %v5217_v26 = vld [vmem:[%s6528_s2 + $0x4a0] ss:$8 sps:$4 sm:$0xff]  }
 0x1fe   : > { %1896 = vmatpush1.bf16.msra.mxu1 %v5163_v2 }
 0x1ff   : > { %1905 = vmatprep.subr.bf16.mxu1 %v5171_v17  ;;  %2175 = vmatpush1.bf16.msra.mxu0 %v5172_v31  ;;  %v5214_v17 = vld [vmem:[%s6528_s2 + $0x4b0] ss:$8 sps:$4 sm:$0xff]   ;;  %v5222_v31 = vld [vmem:[%s6528_s2 + $0x494] ss:$8 sps:$4 sm:$0xff]  }
 0x200   : > { %2176 = vmatprep.subr.bf16.mxu0 %v5180_v40  ;;  %v5228_v40 = vld [vmem:[%s6528_s2 + $0x534] ss:$8 sps:$4 sm:$0xff]  }
 0x202   : > { %1906 = vmatpush2.bf16.msra.mxu1 %v5169_v22  ;;  %v5219_v22 = vld [vmem:[%s6528_s2 + $0x4a4] ss:$8 sps:$4 sm:$0xff]  }
 0x203   : > { %1907 = vmatprep.subr.bf16.mxu1 %v5177_v38  ;;  %2177 = vmatpush1.bf16.msra.mxu0 %v5178_v39  ;;  %v5225_v38 = vld [vmem:[%s6528_s2 + $0x484] ss:$8 sps:$4 sm:$0xff]   ;;  %v5223_v39 = vld [vmem:[%s6528_s2 + $0x480] ss:$8 sps:$4 sm:$0xff]  }
 0x204   : > { %2178 = vmatprep.subr.bf16.mxu0 %v5186_v43  ;;  %v5231_v43 = vld [vmem:[%s6528_s2 + $0x524] ss:$8 sps:$4 sm:$0xff]  }
 0x206   : > { %1908 = vmatpush2.bf16.msra.mxu1 %v5175_v33  ;;  %v5220_v33 = vld [vmem:[%s6528_s2 + $0x490] ss:$8 sps:$4 sm:$0xff]  }
 0x207   : > { %1909 = vmatprep.subr.bf16.mxu1 %v5183_v41  ;;  %2179 = vmatpush1.bf16.msra.mxu0 %v5184_v44  ;;  %v5226_v41 = vld [vmem:[%s6528_s2 + $0x530] ss:$8 sps:$4 sm:$0xff]   ;;  %v5234_v44 = vld [vmem:[%s6528_s2 + $0x514] ss:$8 sps:$4 sm:$0xff]  }
 0x208   : > { %2188 = vmatprep.subr.bf16.mxu0 %v5192_v47  ;;  %v5235_v47 = vld [vmem:[%s6528_s2 + $0x500] ss:$8 sps:$4 sm:$0xff]  }
 0x20a   : > { %1910 = vmatpush2.bf16.msra.mxu1 %v5181_v42  ;;  %v5229_v42 = vld [vmem:[%s6528_s2 + $0x520] ss:$8 sps:$4 sm:$0xff]  }
 0x20b   : > { %1911 = vmatprep.subr.bf16.mxu1 %v5189_v45  ;;  %2189 = vmatpush2.bf16.msra.mxu0 %v5190_v48  ;;  %v5232_v45 = vld [vmem:[%s6528_s2 + $0x510] ss:$8 sps:$4 sm:$0xff]   ;;  %v5391_v48 = vmov 0  }
 0x20c   : > { %2190 = vmatprep.subr.bf16.mxu0 %v5195_v49 }
 0x20e   : > { %1912 = vmatpush2.bf16.msra.mxu1 %v5187_v46  ;;  %v5237_v46 = vld [vmem:[%s6528_s2 + $0x504] ss:$8 sps:$4 sm:$0xff]  }
 0x20f   : > { %2240 = vmatprep.subr.mxu1 %v5774_v36  ;;  %2191 = vmatpush2.bf16.msra.mxu0 %v5193_v50  ;;  %v5201_v36 = vld [vmem:[%s6528_s2 + $0x444] ss:$8 sps:$4 sm:$0xff]  }
 0x210   : > { %2192 = vmatprep.subr.bf16.mxu0 %v5198_v51 }
 0x213   : > { %2193 = vmatpush2.bf16.msra.mxu0 %v5196_v52 }
 0x214   : > { %2194 = vmatprep.subr.bf16.mxu0 %v5201_v36 }
 0x217   : > { %2195 = vmatpush2.bf16.msra.mxu0 %v5199_v53 }
 0x291   : > { %v1349_v55 = vpop.f32.mrf.mxu1 }
 0x292   : > { %v1358_v56 = vadd.f32 %v1349_v55, %v5922_v20 }
 0x293   : > { %v1351_v57 = vpop.f32.mrf.mxu1 }
 0x294   : > { %v1359_v58 = vadd.f32 %v1351_v57, %v5924_v28 }
 0x295   : > { %v1353_v59 = vpop.f32.mrf.mxu1 }
 0x296   : > { %v1360_v61 = vadd.f32 %v1353_v59, %v5926_v35 }
 0x297   : > { %v1355_v62 = vpop.f32.mrf.mxu1 }
 0x298   : > { %v1361_v63 = vadd.f32 %v1355_v62, %v1077_v60 }
 0x29d   : > { %v1720_v0 = vpop.f32.mrf.mxu1  ;;  %v1632_v3 = vpop.f32.mrf.mxu0 }
 0x29e   : > { %v6123_v4 = vadd.f32 %v1632_v3, %v1358_v56  ;;  %v5241_v3 = vld [vmem:[#allocation3 + $0x20] sm:$0xff]  }
 0x29f   : > { %v1722_v5 = vpop.f32.mrf.mxu1  ;;  %v1634_v6 = vpop.f32.mrf.mxu0 }
 0x2a0   : > { %v6125_v7 = vadd.f32 %v1634_v6, %v1359_v58  ;;  %v5244_v6 = vld [vmem:[#allocation3 + $0x8] sm:$0xff]  }
 0x2a1   : > { %v1726_v8 = vpop.f32.mrf.mxu1  ;;  %v1636_v20 = vpop.f32.mrf.mxu0 }
 0x2a2   : > { %v6127_v9 = vadd.f32 %v1636_v20, %v1360_v61  ;;  %v1731_v35 = vpack.c.bf16 %v1726_v8, %v1720_v0  ;;  %v5238_v61 = vld [vmem:[#allocation3 + $0x38] sm:$0xff]   ;;  %v5240_v0 = vld [vmem:[#allocation3 + $0x28] sm:$0xff]   ;;  %v5247_v20 = vld [vmem:[#allocation3 + $0x60] sm:$0xff]  }
 0x2a3   : > { %v1728_v28 = vpop.f32.mrf.mxu1  ;;  %v1638_v10 = vpop.f32.mrf.mxu0  ;;  %v5246_v8 = vld [vmem:[#allocation3 + $0x68] sm:$0xff]  }
 0x2a4   : > { %v1732_v11 = vpack.c.bf16 %v1728_v28, %v1722_v5  ;;  %v6129_v37 = vadd.f32 %v1638_v10, %v1361_v63  ;;  %v5239_v63 = vld [vmem:[#allocation3 + $0x30] sm:$0xff]   ;;  %v5250_v10 = vld [vmem:[#allocation3 + $0x48] sm:$0xff]  }
 0x2a5   : > { %v5243_v5 = vld [vmem:[#allocation3 + $0x10] sm:$0xff]  }
 0x2a6   : > { %4582 = vmatprep.mubr.msk.bf16.mxu1 %vm866_vm1, %v1732_v11  ;;  %v5249_v28 = vld [vmem:[#allocation3 + $0x50] sm:$0xff]   ;;  %v5251_v11 = vld [vmem:[#allocation3 + $0x40] sm:$0xff]  }
 0x2a7   : > { %1914 = vmatmul.mubr.bf16.vlgmr.msra.gmra.mxu1 %v1731_v35  ;;  %v2496_v35 = vlaneseq }
 0x2a8   : > { %2241 = vmatpush1.msra.mxu1 %v5707_v18  ;;  %2284 = vmatprep.mubr.f32.mxu1 %v5390_v1 }
 0x2a9   : > { %2242 = vmatprep.subr.mxu1 %v5712_v19  ;;  %v2003_v12 = vpop.f32.mrf.mxu0  ;;  %v4636_v19 = vld [vmem:[%s6527_s1 + $0x60] sm:$0xff] }
 0x2aa   : > { %2243 = vmatpush1.msra.mxu1 %v5719_v21  ;;  %v5204_v21 = vld [vmem:[%s6528_s2 + $0x4f4] ss:$8 sps:$4 sm:$0xff]  }
 0x2ab   : > { %2244 = vmatprep.subr.mxu1 %v5726_v23  ;;  %v2005_v13 = vpop.f32.mrf.mxu0  ;;  %v5202_v23 = vld [vmem:[%s6528_s2 + $0x4f0] ss:$8 sps:$4 sm:$0xff]  }
 0x2ac   : > { %2245 = vmatpush1.msra.mxu1 %v5730_v24  ;;  %v5207_v24 = vld [vmem:[%s6528_s2 + $0x4e4] ss:$8 sps:$4 sm:$0xff]  }
 0x2ad   : > { %2246 = vmatprep.subr.mxu1 %v5734_v25  ;;  %v2009_v14 = vpop.f32.mrf.mxu0  ;;  %v4637_v25 = vld [vmem:[%s6527_s1 + $0x68] sm:$0x3f] }
 0x2ae   : > { %2247 = vmatpush1.msra.mxu1 %v5741_v27  ;;  %v2014_v2 = vpack.c.bf16 %v2009_v14, %v2003_v12  ;;  %v5205_v27 = vld [vmem:[%s6528_s2 + $0x4e0] ss:$8 sps:$4 sm:$0xff]  }
 0x2af   : > { %2248 = vmatprep.subr.mxu1 %v5748_v29  ;;  %v2011_v18 = vpop.f32.mrf.mxu0  ;;  %v5210_v29 = vld [vmem:[%s6528_s2 + $0x4d4] ss:$8 sps:$4 sm:$0xff]  }
 0x2b0   : > { %v2015_v15 = vpack.c.bf16 %v2011_v18, %v2005_v13  ;;  %2249 = vmatpush1.msra.mxu1 %v5752_v30  ;;  %v5208_v30 = vld [vmem:[%s6528_s2 + $0x4d0] ss:$8 sps:$4 sm:$0xff]   ;;  %v2497_v13 = vshrl.u32 %v2496_v35, 7  ;;  %v5281_v35 = vld [vmem:[#allocation3 + $0x180] sm:$0xff]  }
 0x2b1   : > { %2250 = vmatprep.subr.mxu1 %v5759_v32  ;;  %v5213_v32 = vld [vmem:[%s6528_s2 + $0x4c4] ss:$8 sps:$4 sm:$0xff]  }
 0x2b2   : > { %2251 = vmatpush1.msra.mxu1 %v5766_v34  ;;  %4635 = vmatprep.mubr.msk.bf16.mxu0 %vm866_vm1, %v2015_v15  ;;  %v5211_v34 = vld [vmem:[%s6528_s2 + $0x4c0] ss:$8 sps:$4 sm:$0xff]   ;;  %v2498_v15 = vsub.s32 0, %v2497_v13 }
 0x2b3   : > { %4638 = vmatmul.mubr.msk.f32.vlgmr.msra.gmra.mxu1 %vm523_vm0, %v4636_v19  ;;  %2197 = vmatmul.mubr.bf16.vlgmr.msra.gmra.mxu0 %v2014_v2  ;;  %v2502_v2 = vsub.s32 1, %v2497_v13  ;;  %v5282_v13 = vld [vmem:[#allocation3 + $0x178] sm:$0xff]  }
 0x2b4   : > { %2290 = vmatprep.mubr.f32.mxu1 %v5390_v1  ;;  %2447 = vmatprep.subr.bf16.mxu1 %v5204_v21  ;;  %v2494_v21 = vld [vmem:[%s6529_s3] sm:$0x3] }
 0x2b5   : > { %2448 = vmatpush1.bf16.msra.mxu1 %v5202_v23  ;;  %2598 = vmatprep.mubr.f32.mxu0 %v5390_v1 }
 0x2b6   : > { %2449 = vmatprep.subr.bf16.mxu1 %v5207_v24 }
 0x2b7   : > { %4639 = vmatmul.mubr.msk.f32.gmra.mxu1 %vm523_vm0, %v4637_v25 }
 0x2b9   : > { %2450 = vmatpush1.bf16.msra.mxu1 %v5205_v27 }
 0x2ba   : > { %2451 = vmatprep.subr.bf16.mxu1 %v5210_v29 }
 0x2bd   : > { %2452 = vmatpush1.bf16.msra.mxu1 %v5208_v30  ;;  %v2503_v30 = vrot.slane %v2494_v21, %v2502_v2  ;;  %v5283_v2 = vld [vmem:[#allocation3 + $0x170] sm:$0xff]  }
 0x2be   : > { %2453 = vmatprep.subr.bf16.mxu1 %v5213_v32 }
 0x2c1   : > { %2454 = vmatpush1.bf16.msra.mxu1 %v5211_v34  ;;  %v2499_v34 = vrot.slane %v2494_v21, %v2498_v15  ;;  %v5284_v15 = vld [vmem:[#allocation3 + $0x168] sm:$0xff]   ;;  %v5285_v21 = vld [vmem:[#allocation3 + $0x160] sm:$0xff]  }
 0x2c2   : > { %2455 = vmatprep.subr.bf16.mxu1 %v5216_v16 }
 0x2c5   : > { %2456 = vmatpush1.bf16.msra.mxu1 %v5214_v17 }
 0x2c6   : > { %2457 = vmatprep.subr.bf16.mxu1 %v5219_v22 }
 0x2c9   : > { %2458 = vmatpush1.bf16.msra.mxu1 %v5217_v26 }
 0x2ca   : > { %2459 = vmatprep.subr.bf16.mxu1 %v5222_v31 }
 0x2cd   : > { %2460 = vmatpush1.bf16.msra.mxu1 %v5220_v33 }
 0x2ce   : > { %2461 = vmatprep.subr.bf16.mxu1 %v5225_v38 }
 0x2d1   : > { %2462 = vmatpush1.bf16.msra.mxu1 %v5223_v39 }
 0x2d2   : > { %2471 = vmatprep.subr.bf16.mxu1 %v5228_v40 }
 0x2d5   : > { %2472 = vmatpush2.bf16.msra.mxu1 %v5226_v41 }
 0x2d6   : > { %2473 = vmatprep.subr.bf16.mxu1 %v5231_v43 }
 0x2d9   : > { %2474 = vmatpush2.bf16.msra.mxu1 %v5229_v42 }
 0x2da   : > { %2475 = vmatprep.subr.bf16.mxu1 %v5234_v44 }
 0x2dd   : > { %2476 = vmatpush2.bf16.msra.mxu1 %v5232_v45 }
 0x2de   : > { %2477 = vmatprep.subr.bf16.mxu1 %v5237_v46 }
 0x2e1   : > { %2478 = vmatpush2.bf16.msra.mxu1 %v5235_v47 }
 0x2e2   : > { %2957 = vmatprep.subr.bf16.mxu1 %v5391_v48 }
 0x367   : > { %v1915_v49 = vpop.f32.mrf.mxu1 }
 0x368   : > { %v6229_v50 = vadd.f32 %v1915_v49, %v6123_v4  ;;  %v5242_v4 = vld [vmem:[#allocation3 + $0x18] sm:$0xff]  }
 0x369   : > { %v1917_v51 = vpop.f32.mrf.mxu1  ;;  %v2522_v49 = vld [vmem:[%s6530_s4] sm:$0x1f] }
 0x36a   : > { %v1925_v52 = vadd.f32 %v1917_v51, %v6125_v7  ;;  %v5245_v7 = vld [vmem:[#allocation3] sm:$0xff]  }
 0x36b   : > { %v1919_v36 = vpop.f32.mrf.mxu1  ;;  %v4692_v51 = vld [vmem:[%s6530_s4 + $0x8] sm:$0x1f] }
 0x36c   : > { %v6233_v53 = vadd.f32 %v1919_v36, %v6127_v9  ;;  %v5248_v9 = vld [vmem:[#allocation3 + $0x58] sm:$0xff]   ;;  %v5253_v36 = vld [vmem:[#allocation3 + $0xa0] sm:$0xff]  }
 0x36d   : > { %v1921_v54 = vpop.f32.mrf.mxu1 }
 0x36e   : > { %v6236_v55 = vadd.f32 %v1921_v54, %v6129_v37  ;;  %v5255_v54 = vld [vmem:[#allocation3 + $0x90] sm:$0xff]  }
 0x373   : > { %v2286_v56 = vpop.f32.mrf.mxu1  ;;  %v2198_v37 = vpop.f32.mrf.mxu0 }
 0x374   : > { %v2207_v23 = vadd.f32 %v2198_v37, %v6229_v50  ;;  %v5266_v37 = vld [vmem:[#allocation3 + $0x118] sm:$0xff]  }
 0x375   : > { %v2288_v57 = vpop.f32.mrf.mxu1  ;;  %v2200_v12 = vpop.f32.mrf.mxu0 }
 0x376   : > { %v2208_v19 = vadd.f32 %v2200_v12, %v1925_v52  ;;  %v5252_v52 = vld [vmem:[#allocation3 + $0xa8] sm:$0xff]   ;;  %v5267_v12 = vld [vmem:[#allocation3 + $0x110] sm:$0xff]  }
 0x377   : > { %v2292_v58 = vpop.f32.mrf.mxu1  ;;  %v2202_v14 = vpop.f32.mrf.mxu0 }
 0x378   : > { %v2297_v62 = vpack.c.bf16 %v2292_v58, %v2286_v56  ;;  %v2209_v27 = vadd.f32 %v2202_v14, %v6233_v53  ;;  %v5254_v53 = vld [vmem:[#allocation3 + $0x98] sm:$0xff]   ;;  %v5257_v56 = vld [vmem:[#allocation3 + $0x80] sm:$0xff]   ;;  %v5259_v58 = vld [vmem:[#allocation3 + $0x70] sm:$0xff]  }
 0x379   : > { %v2294_v59 = vpop.f32.mrf.mxu1  ;;  %v2204_v24 = vpop.f32.mrf.mxu0  ;;  %v5268_v14 = vld [vmem:[#allocation3 + $0x108] sm:$0xff]  }
 0x37a   : > { %v2298_v60 = vpack.c.bf16 %v2294_v59, %v2288_v57  ;;  %v2210_v17 = vadd.f32 %v2204_v24, %v6236_v55  ;;  %v5256_v55 = vld [vmem:[#allocation3 + $0x88] sm:$0xff]   ;;  %v5258_v57 = vld [vmem:[#allocation3 + $0x78] sm:$0xff]  }
 0x37b   : > { %v5260_v59 = vld [vmem:[#allocation3 + $0xd8] sm:$0xff]  }
 0x37c   : > { %4688 = vmatprep.mubr.msk.bf16.mxu1 %vm866_vm1, %v2298_v60  ;;  %v5261_v60 = vld [vmem:[#allocation3 + $0xd0] sm:$0xff]   ;;  %v5286_v24 = vld [vmem:[#allocation3 + $0x158] sm:$0xff]   ;;  %vm4275_vm1 = vcmask 0  }
 0x37d   : > { %2480 = vmatmul.mubr.bf16.vlgmr.msra.gmra.mxu1 %v2297_v62  ;;  %v5263_v62 = vld [vmem:[#allocation3 + $0xc0] sm:$0xff]  }
 0x37e   : > { %2958 = vmatpush1.bf16.msra.mxu1 %v5238_v61  ;;  %v5262_v61 = vld [vmem:[#allocation3 + $0xc8] sm:$0xff]  }
 0x37f   : > { %2959 = vmatprep.subr.bf16.mxu1 %v5391_v48 }
 0x382   : > { %2960 = vmatpush1.bf16.msra.mxu1 %v5239_v63  ;;  %v5264_v63 = vld [vmem:[#allocation3 + $0xb8] sm:$0xff]  }
 0x383   : > { %2961 = vmatprep.subr.bf16.mxu1 %v5391_v48 }
 0x386   : > { %2962 = vmatpush1.bf16.msra.mxu1 %v5240_v0  ;;  %v5265_v0 = vld [vmem:[#allocation3 + $0xb0] sm:$0xff]  }
 0x387   : > { %2963 = vmatprep.subr.bf16.mxu1 %v5391_v48 }
 0x38a   : > { %2964 = vmatpush1.bf16.msra.mxu1 %v5241_v3 }
 0x38b   : > { %2965 = vmatprep.subr.bf16.mxu1 %v5391_v48 }
 0x38e   : > { %2966 = vmatpush1.bf16.msra.mxu1 %v5242_v4 }
 0x38f   : > { %2967 = vmatprep.subr.bf16.mxu1 %v5391_v48 }
 0x392   : > { %2968 = vmatpush1.bf16.msra.mxu1 %v5243_v5 }
 0x393   : > { %2969 = vmatprep.subr.bf16.mxu1 %v5391_v48 }
 0x396   : > { %2970 = vmatpush1.bf16.msra.mxu1 %v5244_v6 }
 0x397   : > { %2971 = vmatprep.subr.bf16.mxu1 %v5391_v48 }
 0x39a   : > { %2972 = vmatpush1.bf16.msra.mxu1 %v5245_v7 }
 0x39b   : > { %2977 = vmatprep.subr.bf16.mxu1 %v5391_v48 }
 0x39e   : > { %2978 = vmatpush2.bf16.msra.mxu1 %v5246_v8 }
 0x39f   : > { %2979 = vmatprep.subr.bf16.mxu1 %v5391_v48 }
 0x3a2   : > { %2980 = vmatpush2.bf16.msra.mxu1 %v5247_v20 }
 0x3a3   : > { %2981 = vmatprep.subr.bf16.mxu1 %v5391_v48 }
 0x3a6   : > { %2982 = vmatpush2.bf16.msra.mxu1 %v5248_v9 }
 0x3a7   : > { %2983 = vmatprep.subr.bf16.mxu1 %v5391_v48 }
 0x3aa   : > { %2984 = vmatpush2.bf16.msra.mxu1 %v5249_v28  ;;  %v4745_v28 = vld [vmem:[%s6530_s4 + $0x18] sm:$0x1f] }
 0x3ab   : > { %2985 = vmatprep.subr.bf16.mxu1 %v5391_v48 }
 0x3ae   : > { %2986 = vmatpush2.bf16.msra.mxu1 %v5250_v10  ;;  %v5280_v10 = vld [vmem:[#allocation3 + $0x188] sm:$0xff]  }
 0x3af   : > { %2987 = vmatprep.subr.bf16.mxu1 %v5391_v48 }
 0x3b2   : > { %2988 = vmatpush2.bf16.msra.mxu1 %v5251_v11  ;;  %v4726_v11 = vld [vmem:[%s6530_s4 + $0x10] sm:$0x1f] }
 0x43d   : > { %v2481_v18 = vpop.f32.mrf.mxu1 }
 0x43e   : > { %v2490_v32 = vadd.f32 %v2481_v18, %v2207_v23  ;;  %v5269_v18 = vld [vmem:[#allocation3 + $0x100] sm:$0xff]   ;;  %v5271_v23 = vld [vmem:[#allocation3 + $0xf0] sm:$0xff]  }
 0x43f   : > { %v2483_v25 = vpop.f32.mrf.mxu1 }
 0x440   : > { %v2491_v29 = vadd.f32 %v2483_v25, %v2208_v19  ;;  %v2506_v39 = vadd.f32 %v2499_v34, %v2490_v32  ;;  %v5270_v19 = vld [vmem:[#allocation3 + $0xf8] sm:$0xff]   ;;  %v5272_v25 = vld [vmem:[#allocation3 + $0xe8] sm:$0xff]  }
 0x441   : > { %v2485_v16 = vpop.f32.mrf.mxu1  ;;  %v5274_v32 = vld [vmem:[#allocation3 + $0x148] sm:$0xff]  }
 0x442   : > { %v2492_v22 = vadd.f32 %v2485_v16, %v2209_v27  ;;  %v2507_v31 = vadd.f32 %v2503_v30, %v2491_v29  ;;  %v2514_v44 = vmul.f32 0.01, %v2506_v39  ;;  %vm2510_vm6 = vcmp.ge.f32.partialorder %v2506_v39, 0.0  ;;  %v5287_v27 = vld [vmem:[#allocation3 + $0x150] sm:$0xff]   ;;  %v5273_v29 = vld [vmem:[#allocation3 + $0xe0] sm:$0xff]   ;;  %v5276_v16 = vld [vmem:[#allocation3 + $0x138] sm:$0xff]  }
 0x443   : > { %v2487_v26 = vpop.f32.mrf.mxu1 }
 0x444   : > { %v2508_v33 = vadd.f32 %v2499_v34, %v2492_v22  ;;  %v2493_v38 = vadd.f32 %v2487_v26, %v2210_v17  ;;  %v2515_v42 = vmul.f32 0.01, %v2507_v31  ;;  %vm2511_vm5 = vcmp.ge.f32.partialorder %v2507_v31, 0.0  ;;  %v5275_v34 = vld [vmem:[#allocation3 + $0x140] sm:$0xff]   ;;  %v5277_v17 = vld [vmem:[#allocation3 + $0x130] sm:$0xff]   ;;  %v5278_v22 = vld [vmem:[#allocation3 + $0x128] sm:$0xff]  }
 0x445   : > { %v6274_v50 = vsel %vm2510_vm6, %v2506_v39, %v2514_v44  ;;  %v5279_v26 = vld [vmem:[#allocation3 + $0x120] sm:$0xff]   ;;  %v5292_v39 = vld [vmem:[#allocation3 + $0x198] sm:$0xff]  }
 0x446   : > { %v2509_v40 = vadd.f32 %v2503_v30, %v2493_v38  ;;  %v2516_v41 = vmul.f32 0.01, %v2508_v33  ;;  %vm2512_vm3 = vcmp.ge.f32.partialorder %v2508_v33, 0.0  ;;  %v6268_v47 = vsel %vm2511_vm5, %v2507_v31, %v2515_v42  ;;  %v5288_v30 = vld [vmem:[#allocation3 + $0x1b8] sm:$0xff]   ;;  %v5289_v31 = vld [vmem:[#allocation3 + $0x1b0] sm:$0xff]   ;;  %v5291_v38 = vld [vmem:[#allocation3 + $0x1a0] sm:$0xff]  }
 0x448   : > { %vm2513_vm4 = vcmp.ge.f32.partialorder %v2509_v40, 0.0  ;;  %v2517_v43 = vmul.f32 0.01, %v2509_v40  ;;  %v6264_v46 = vsel %vm2512_vm3, %v2508_v33, %v2516_v41  ;;  %v5290_v33 = vld [vmem:[#allocation3 + $0x1a8] sm:$0xff]  }
 0x44a   : > { %v6258_v45 = vsel %vm2513_vm4, %v2509_v40, %v2517_v43  ;;  %v5293_v40 = vld [vmem:[#allocation3 + $0x190] sm:$0xff]  }
 0x44b   : > { %4689 = vmatprep.subr.msk.mxu0 %vm2527_vm2, %v6258_v45  ;;  %4746 = vmatprep.subr.msk.mxu1 %vm2527_vm2, %v6258_v45 }
 0x44c   : > { %4690 = vmatpush1.msk.msra.mxu0 %vm2527_vm2, %v6264_v46 }
 0x44d   : > { %2564 = vmatprep.subr.mxu0 %v6268_v47 }
 0x44e   : > { %2565 = vmatpush1.msra.mxu0 %v6274_v50 }
 0x44f   : > { %4691 = vmatmul.mubr.msk.f32.vlgmr.msra.gmra.mxu0 %vm2523_vm7, %v2522_v49  ;;  %4693 = vmatprep.subr.msk.mxu0 %vm2527_vm2, %v6258_v45 }
 0x450   : > { %4694 = vmatpush1.msk.msra.mxu0 %vm2527_vm2, %v6264_v46  ;;  %2704 = vmatprep.mubr.f32.mxu0 %v5390_v1 }
 0x451   : > { %2670 = vmatprep.subr.mxu0 %v6268_v47 }
 0x452   : > { %2671 = vmatpush1.msra.mxu0 %v6274_v50 }
 0x453   : > { %4695 = vmatmul.mubr.msk.f32.vlgmr.msra.gmra.mxu0 %vm2523_vm7, %v4692_v51  ;;  %2830 = vmatprep.subr.bf16.mxu0 %v5391_v48 }
 0x454   : > { %2831 = vmatpush1.bf16.msra.mxu0 %v5252_v52 }
 0x455   : > { %2832 = vmatprep.subr.bf16.mxu0 %v5391_v48 }
 0x458   : > { %2833 = vmatpush1.bf16.msra.mxu0 %v5253_v36 }
 0x459   : > { %2834 = vmatprep.subr.bf16.mxu0 %v5391_v48 }
 0x45c   : > { %2835 = vmatpush1.bf16.msra.mxu0 %v5254_v53 }
 0x45d   : > { %2836 = vmatprep.subr.bf16.mxu0 %v5391_v48 }
 0x460   : > { %2837 = vmatpush1.bf16.msra.mxu0 %v5255_v54 }
 0x461   : > { %2838 = vmatprep.subr.bf16.mxu0 %v5391_v48 }
 0x464   : > { %2839 = vmatpush1.bf16.msra.mxu0 %v5256_v55 }
 0x465   : > { %2840 = vmatprep.subr.bf16.mxu0 %v5391_v48 }
 0x468   : > { %2841 = vmatpush1.bf16.msra.mxu0 %v5257_v56 }
 0x469   : > { %2842 = vmatprep.subr.bf16.mxu0 %v5391_v48 }
 0x46c   : > { %2843 = vmatpush1.bf16.msra.mxu0 %v5258_v57 }
 0x46d   : > { %2844 = vmatprep.subr.bf16.mxu0 %v5391_v48 }
 0x470   : > { %2845 = vmatpush1.bf16.msra.mxu0 %v5259_v58 }
 0x471   : > { %2850 = vmatprep.subr.bf16.mxu0 %v5391_v48 }
 0x474   : > { %2851 = vmatpush2.bf16.msra.mxu0 %v5260_v59 }
 0x475   : > { %2852 = vmatprep.subr.bf16.mxu0 %v5391_v48 }
 0x478   : > { %2853 = vmatpush2.bf16.msra.mxu0 %v5261_v60 }
 0x479   : > { %2854 = vmatprep.subr.bf16.mxu0 %v5391_v48 }
 0x47c   : > { %2855 = vmatpush2.bf16.msra.mxu0 %v5262_v61  ;;  %v4764_v61 = vld [vmem:[%s6530_s4 + $0x20] sm:$0x1f] }
 0x47d   : > { %2856 = vmatprep.subr.bf16.mxu0 %v5391_v48 }
 0x480   : > { %2857 = vmatpush2.bf16.msra.mxu0 %v5263_v62  ;;  %v5294_v62 = vld [vmem:[#allocation3 + $0x1f8] sm:$0xff]  }
 0x481   : > { %2858 = vmatprep.subr.bf16.mxu0 %v5391_v48 }
 0x484   : > { %2859 = vmatpush2.bf16.msra.mxu0 %v5264_v63  ;;  %v5295_v63 = vld [vmem:[#allocation3 + $0x1f0] sm:$0xff]  }
 0x485   : > { %2860 = vmatprep.subr.bf16.mxu0 %v5391_v48 }
 0x488   : > { %2861 = vmatpush2.bf16.msra.mxu0 %v5265_v0  ;;  %v5299_v0 = vld [vmem:[#allocation3 + $0x1d0] sm:$0xff]  }
 0x489   : > { %4727 = vmatprep.subr.msk.mxu0 %vm2527_vm2, %v6258_v45 }
 0x50f   : > { %v2600_v3 = vpop.f32.mrf.mxu0 }
 0x510   : > { %v2605_v6 = vpack.c.bf16 %v2600_v3, %v2600_v3  ;;  %v5300_v3 = vld [vmem:[#allocation3 + $0x1c8] sm:$0xff]  }
 0x511   : > { %v2602_v4 = vpop.f32.mrf.mxu0 }
 0x512   : > { %v2606_v5 = vpack.c.bf16 %v2602_v4, %v2602_v4  ;;  %v5301_v4 = vld [vmem:[#allocation3 + $0x1c0] sm:$0xff]  }
 0x513   : > { %v2706_v7 = vpop.f32.mrf.mxu0 }
 0x514   : > { %4725 = vmatprep.mubr.msk.bf16.mxu1 %vm2826_vm8, %v2606_v5  ;;  %v2711_v9 = vpack.c.bf16 %v2706_v7, %v2706_v7  ;;  %v5302_v5 = vld [vmem:[#allocation3 + $0x228] sm:$0xff]   ;;  %v5304_v7 = vld [vmem:[#allocation3 + $0x218] sm:$0xff]  }
 0x515   : > { %v2708_v8 = vpop.f32.mrf.mxu0  ;;  %2990 = vmatmul.mubr.bf16.vlgmr.msra.gmra.mxu1 %v2605_v6  ;;  %v5303_v6 = vld [vmem:[#allocation3 + $0x220] sm:$0xff]  }
 0x516   : > { %v2712_v20 = vpack.c.bf16 %v2708_v8, %v2708_v8  ;;  %4747 = vmatpush1.msk.msra.mxu1 %vm2527_vm2, %v6264_v46  ;;  %3301 = vmatprep.mubr.f32.mxu1 %v5390_v1  ;;  %v5305_v8 = vld [vmem:[#allocation3 + $0x210] sm:$0xff]  }
 0x517   : > { %3267 = vmatprep.subr.mxu1 %v6268_v47 }
 0x518   : > { %3268 = vmatpush1.msra.mxu1 %v6274_v50  ;;  %4710 = vmatprep.mubr.msk.bf16.mxu0 %vm2826_vm8, %v2712_v20  ;;  %v5306_v20 = vld [vmem:[#allocation3 + $0x208] sm:$0xff]  }
 0x519   : > { %2863 = vmatmul.mubr.bf16.vlgmr.msra.gmra.mxu0 %v2711_v9  ;;  %3426 = vmatprep.subr.bf16.mxu1 %v5391_v48  ;;  %v5307_v9 = vld [vmem:[#allocation3 + $0x200] sm:$0xff]  }
 0x51a   : > { %4728 = vmatpush1.msk.msra.mxu0 %vm2527_vm2, %v6264_v46  ;;  %3066 = vmatprep.mubr.f32.mxu0 %v5390_v1 }
 0x51b   : > { %3032 = vmatprep.subr.mxu0 %v6268_v47 }
 0x51c   : > { %3033 = vmatpush1.msra.mxu0 %v6274_v50 }
 0x51d   : > { %3191 = vmatprep.subr.bf16.mxu0 %v5391_v48  ;;  %4748 = vmatmul.mubr.msk.f32.vlgmr.msra.gmra.mxu1 %vm2523_vm7, %v4745_v28  ;;  %v5309_v28 = vld [vmem:[%s6533_s7 + $0x48] sm:$0xff]  }
 0x51e   : > { %3427 = vmatpush1.bf16.msra.mxu1 %v5280_v10 }
 0x51f   : > { %3428 = vmatprep.subr.bf16.mxu1 %v5391_v48 }
 0x521   : > { %4729 = vmatmul.mubr.msk.f32.vlgmr.msra.gmra.mxu0 %vm2523_vm7, %v4726_v11 }
 0x522   : > { %3192 = vmatpush1.bf16.msra.mxu0 %v5266_v37  ;;  %3429 = vmatpush1.bf16.msra.mxu1 %v5281_v35 }
 0x523   : > { %3193 = vmatprep.subr.bf16.mxu0 %v5391_v48  ;;  %3430 = vmatprep.subr.bf16.mxu1 %v5391_v48 }
 0x526   : > { %3194 = vmatpush1.bf16.msra.mxu0 %v5267_v12  ;;  %3431 = vmatpush1.bf16.msra.mxu1 %v5282_v13 }
 0x527   : > { %3195 = vmatprep.subr.bf16.mxu0 %v5391_v48  ;;  %3432 = vmatprep.subr.bf16.mxu1 %v5391_v48 }
 0x52a   : > { %3196 = vmatpush1.bf16.msra.mxu0 %v5268_v14  ;;  %3433 = vmatpush1.bf16.msra.mxu1 %v5283_v2 }
 0x52b   : > { %3197 = vmatprep.subr.bf16.mxu0 %v5391_v48  ;;  %3434 = vmatprep.subr.bf16.mxu1 %v5391_v48 }
 0x52e   : > { %3198 = vmatpush1.bf16.msra.mxu0 %v5269_v18  ;;  %3435 = vmatpush1.bf16.msra.mxu1 %v5284_v15 }
 0x52f   : > { %3199 = vmatprep.subr.bf16.mxu0 %v5391_v48  ;;  %3436 = vmatprep.subr.bf16.mxu1 %v5391_v48 }
 0x532   : > { %3200 = vmatpush1.bf16.msra.mxu0 %v5270_v19  ;;  %3437 = vmatpush1.bf16.msra.mxu1 %v5285_v21 }
 0x533   : > { %3201 = vmatprep.subr.bf16.mxu0 %v5391_v48  ;;  %3438 = vmatprep.subr.bf16.mxu1 %v5391_v48 }
 0x536   : > { %3202 = vmatpush1.bf16.msra.mxu0 %v5271_v23  ;;  %3439 = vmatpush1.bf16.msra.mxu1 %v5286_v24  ;;  %v5308_v23 = vld [vmem:[%s6533_s7 + $0x70] sm:$0xff]  }
 0x537   : > { %3203 = vmatprep.subr.bf16.mxu0 %v5391_v48  ;;  %3440 = vmatprep.subr.bf16.mxu1 %v5391_v48 }
 0x53a   : > { %3204 = vmatpush1.bf16.msra.mxu0 %v5272_v25  ;;  %3441 = vmatpush1.bf16.msra.mxu1 %v5287_v27  ;;  %v5310_v25 = vld [vmem:[%s6533_s7 + $0x68] sm:$0xff]   ;;  %v5311_v27 = vld [vmem:[%s6533_s7 + $0x40] sm:$0xff]  }
 0x53b   : > { %3205 = vmatprep.subr.bf16.mxu0 %v5391_v48  ;;  %3446 = vmatprep.subr.bf16.mxu1 %v5391_v48 }
 0x53e   : > { %3206 = vmatpush1.bf16.msra.mxu0 %v5273_v29  ;;  %3447 = vmatpush2.bf16.msra.mxu1 %v5288_v30  ;;  %v5312_v29 = vld [vmem:[%s6533_s7 + $0x60] sm:$0xff]   ;;  %v5313_v30 = vld [vmem:[%s6533_s7 + $0x38] sm:$0xff]  }
 0x53f   : > { %3211 = vmatprep.subr.bf16.mxu0 %v5391_v48  ;;  %3448 = vmatprep.subr.bf16.mxu1 %v5391_v48 }
 0x542   : > { %3212 = vmatpush2.bf16.msra.mxu0 %v5274_v32  ;;  %3449 = vmatpush2.bf16.msra.mxu1 %v5289_v31  ;;  %v5314_v32 = vld [vmem:[%s6533_s7 + $0x58] sm:$0xff]  }
 0x543   : > { %3213 = vmatprep.subr.bf16.mxu0 %v5391_v48  ;;  %3450 = vmatprep.subr.bf16.mxu1 %v5391_v48 }
 0x546   : > { %3214 = vmatpush2.bf16.msra.mxu0 %v5275_v34  ;;  %3451 = vmatpush2.bf16.msra.mxu1 %v5290_v33  ;;  %v5315_v34 = vld [vmem:[%s6533_s7 + $0x30] sm:$0xff]  }
 0x547   : > { %3215 = vmatprep.subr.bf16.mxu0 %v5391_v48  ;;  %3452 = vmatprep.subr.bf16.mxu1 %v5391_v48 }
 0x54a   : > { %3216 = vmatpush2.bf16.msra.mxu0 %v5276_v16  ;;  %3453 = vmatpush2.bf16.msra.mxu1 %v5291_v38  ;;  %v5316_v16 = vld [vmem:[%s6533_s7 + $0x50] sm:$0xff]  }
 0x54b   : > { %3217 = vmatprep.subr.bf16.mxu0 %v5391_v48  ;;  %3454 = vmatprep.subr.bf16.mxu1 %v5391_v48 }
 0x54e   : > { %3218 = vmatpush2.bf16.msra.mxu0 %v5277_v17  ;;  %3455 = vmatpush2.bf16.msra.mxu1 %v5292_v39  ;;  %v5317_v17 = vld [vmem:[%s6533_s7 + $0x28] sm:$0xff]  }
 0x54f   : > { %3219 = vmatprep.subr.bf16.mxu0 %v5391_v48  ;;  %3456 = vmatprep.subr.bf16.mxu1 %v5391_v48 }
 0x552   : > { %3220 = vmatpush2.bf16.msra.mxu0 %v5278_v22  ;;  %3457 = vmatpush2.bf16.msra.mxu1 %v5293_v40 }
 0x553   : > { %3221 = vmatprep.subr.bf16.mxu0 %v5391_v48  ;;  %4883 = vmatprep.subr.bf16.mxu1 %v5390_v1 }
 0x556   : > { %3222 = vmatpush2.bf16.msra.mxu0 %v5279_v26  ;;  %v4783_v26 = vld [vmem:[%s6532_s6] ss:$0 sm:$0xff] }
 0x557   : > { %4765 = vmatprep.subr.msk.mxu0 %vm2527_vm2, %v6258_v45 }
 0x5d5   : > { %v2991_v41 = vpop.f32.mrf.mxu1 }
 0x5d7   : > { %v2993_v42 = vpop.f32.mrf.mxu1 }
 0x5d9   : > { %v2864_v43 = vpop.f32.mrf.mxu0  ;;  %v2994_v44 = vpop.f32.mrf.mxu1 }
 0x5da   : > { %v6356_v45 = vadd.f32 %v2991_v41, %v2864_v43 }
 0x5db   : > { %v2866_v49 = vpop.f32.mrf.mxu0  ;;  %v2995_v51 = vpop.f32.mrf.mxu1 }
 0x5dd   : > { %v2867_v52 = vpop.f32.mrf.mxu0  ;;  %v3303_v36 = vpop.f32.mrf.mxu1 }
 0x5de   : > { %v3308_v54 = vpack.c.bf16 %v3303_v36, %v3303_v36  ;;  %v5318_v52 = vld [vmem:[%s6533_s7 + $0x20] sm:$0xff]  }
 0x5df   : > { %v2868_v53 = vpop.f32.mrf.mxu0  ;;  %v3305_v55 = vpop.f32.mrf.mxu1 }
 0x5e0   : > { %v3309_v56 = vpack.c.bf16 %v3305_v55, %v3305_v55  ;;  %v5319_v53 = vld [vmem:[%s6533_s7 + $0x18] sm:$0xff]   ;;  %v5321_v55 = vld [vmem:[%s6533_s7 + $0x8] sm:$0xff]  }
 0x5e1   : > { %v3068_v57 = vpop.f32.mrf.mxu0 }
 0x5e2   : > { %4763 = vmatprep.mubr.msk.bf16.mxu1 %vm2826_vm8, %v3309_v56  ;;  %v3073_v60 = vpack.c.bf16 %v3068_v57, %v3068_v57  ;;  %v5322_v56 = vld [vmem:[%s6533_s7] sm:$0xff]   ;;  %v5323_v57 = vld [vmem:[%s6535_s9 + $0x28] sm:$0xff]  }
 0x5e3   : > { %v3070_v58 = vpop.f32.mrf.mxu0  ;;  %3459 = vmatmul.mubr.bf16.vlgmr.msra.gmra.mxu1 %v3308_v54  ;;  %v5320_v54 = vld [vmem:[%s6533_s7 + $0x10] sm:$0xff]  }
 0x5e4   : > { %v3074_v59 = vpack.c.bf16 %v3070_v58, %v3070_v58  ;;  %4884 = vmatpush3.bf16.msra.mxu1 %v5309_v28  ;;  %4893 = vmatprep.mubr.msk.bf16.mxu1 %vm5392_vm9, %v5390_v1  ;;  %v5324_v58 = vld [vmem:[%s6535_s9 + $0x40] sm:$0xff]  }
 0x5e5   : > { %4885 = vmatprep.subr.bf16.mxu1 %v5390_v1 }
 0x5e6   : > { %4744 = vmatprep.mubr.msk.bf16.mxu0 %vm2826_vm8, %v3074_v59  ;;  %v5325_v59 = vld [vmem:[%s6535_s9 + $0x20] sm:$0xff]  }
 0x5e7   : > { %3224 = vmatmul.mubr.bf16.vlgmr.msra.gmra.mxu0 %v3073_v60  ;;  %v5326_v60 = vld [vmem:[%s6535_s9 + $0x38] sm:$0xff]  }
 0x5e8   : > { %4766 = vmatpush1.msk.msra.mxu0 %vm2527_vm2, %v6264_v46  ;;  %3536 = vmatprep.mubr.f32.mxu0 %v5390_v1  ;;  %v5296_v46 = vld [vmem:[#allocation3 + $0x1e8] sm:$0xff]  }
 0x5e9   : > { %3502 = vmatprep.subr.mxu0 %v6268_v47  ;;  %v5297_v47 = vld [vmem:[#allocation3 + $0x1e0] sm:$0xff]   ;;  %4886 = vmatpush3.bf16.msra.mxu1 %v5311_v27 }
 0x5ea   : > { %3503 = vmatpush1.msra.mxu0 %v6274_v50  ;;  %v5298_v50 = vld [vmem:[#allocation3 + $0x1d8] sm:$0xff]   ;;  %4887 = vmatprep.subr.bf16.mxu1 %v5390_v1 }
 0x5eb   : > { %3661 = vmatprep.subr.bf16.mxu0 %v5391_v48 }
 0x5ed   : > { %4888 = vmatpush3.bf16.msra.mxu1 %v5313_v30 }
 0x5ee   : > { %4889 = vmatprep.subr.bf16.mxu1 %v5390_v1 }
 0x5ef   : > { %4767 = vmatmul.mubr.msk.f32.vlgmr.msra.gmra.mxu0 %vm2523_vm7, %v4764_v61  ;;  %v5327_v61 = vld [vmem:[%s6535_s9 + $0x18] sm:$0xff]  }
 0x5f0   : > { %3662 = vmatpush1.bf16.msra.mxu0 %v5294_v62  ;;  %v5328_v62 = vld [vmem:[%s6535_s9 + $0x30] sm:$0xff]  }
 0x5f1   : > { %3663 = vmatprep.subr.bf16.mxu0 %v5391_v48  ;;  %4890 = vmatpush3.bf16.msra.mxu1 %v5315_v34 }
 0x5f2   : > { %4891 = vmatprep.subr.bf16.mxu1 %v5390_v1 }
 0x5f4   : > { %3664 = vmatpush1.bf16.msra.mxu0 %v5295_v63 }
 0x5f5   : > { %3665 = vmatprep.subr.bf16.mxu0 %v5391_v48  ;;  %4892 = vmatpush3.bf16.msra.mxu1 %v5317_v17 }
 0x5f6   : > { %4897 = vmatprep.subr.bf16.mxu1 %v5390_v1 }
 0x5f8   : > { %3666 = vmatpush1.bf16.msra.mxu0 %v5296_v46 }
 0x5f9   : > { %3667 = vmatprep.subr.bf16.mxu0 %v5391_v48 }
 0x5fc   : > { %3668 = vmatpush1.bf16.msra.mxu0 %v5297_v47 }
 0x5fd   : > { %3669 = vmatprep.subr.bf16.mxu0 %v5391_v48 }
 0x600   : > { %3670 = vmatpush1.bf16.msra.mxu0 %v5298_v50 }
 0x601   : > { %3671 = vmatprep.subr.bf16.mxu0 %v5391_v48 }
 0x604   : > { %3672 = vmatpush1.bf16.msra.mxu0 %v5299_v0 }
 0x605   : > { %3673 = vmatprep.subr.bf16.mxu0 %v5391_v48 }
 0x608   : > { %3674 = vmatpush1.bf16.msra.mxu0 %v5300_v3 }
 0x609   : > { %3675 = vmatprep.subr.bf16.mxu0 %v5391_v48 }
 0x60c   : > { %3676 = vmatpush1.bf16.msra.mxu0 %v5301_v4 }
 0x60d   : > { %3681 = vmatprep.subr.bf16.mxu0 %v5391_v48 }
 0x610   : > { %3682 = vmatpush2.bf16.msra.mxu0 %v5302_v5 }
 0x611   : > { %3683 = vmatprep.subr.bf16.mxu0 %v5391_v48 }
 0x614   : > { %3684 = vmatpush2.bf16.msra.mxu0 %v5303_v6 }
 0x615   : > { %3685 = vmatprep.subr.bf16.mxu0 %v5391_v48 }
 0x618   : > { %3686 = vmatpush2.bf16.msra.mxu0 %v5304_v7 }
 0x619   : > { %3687 = vmatprep.subr.bf16.mxu0 %v5391_v48 }
 0x61c   : > { %3688 = vmatpush2.bf16.msra.mxu0 %v5305_v8  ;;  %v4822_v8 = vld [vmem:[%s6534_s8] ss:$0 sm:$0xff] }
 0x61d   : > { %3689 = vmatprep.subr.bf16.mxu0 %v5391_v48 }
 0x620   : > { %3690 = vmatpush2.bf16.msra.mxu0 %v5306_v20 }
 0x621   : > { %3691 = vmatprep.subr.bf16.mxu0 %v5391_v48 }
 0x624   : > { %3692 = vmatpush2.bf16.msra.mxu0 %v5307_v9 }
 0x625   : > { %4911 = vmatprep.subr.bf16.mxu0 %v5390_v1 }
 0x6a3   : > { %v3460_v10 = vpop.f32.mrf.mxu1 }
 0x6a5   : > { %v3462_v11 = vpop.f32.mrf.mxu1 }
 0x6a7   : > { %v3225_v37 = vpop.f32.mrf.mxu0  ;;  %v3463_v35 = vpop.f32.mrf.mxu1 }
 0x6a8   : > { %v3231_v12 = vadd.f32 %v3225_v37, %v6356_v45 }
 0x6a9   : > { %v3227_v13 = vpop.f32.mrf.mxu0  ;;  %v3464_v14 = vpop.f32.mrf.mxu1 }
 0x6aa   : > { %v3466_v48 = vadd.f32 %v3460_v10, %v3231_v12  ;;  %v5329_v13 = vld [vmem:[%s6535_s9 + $0x10] sm:$0xff]  }
 0x6ab   : > { %v3228_v2 = vpop.f32.mrf.mxu0 }
 0x6ac   : > { %v5330_v2 = vld [vmem:[%s6535_s9 + $0x8] sm:$0xff]  }
 0x6ad   : > { %v3229_v18 = vpop.f32.mrf.mxu0 }
 0x6ae   : > { %v5331_v18 = vld [vmem:[%s6535_s9] sm:$0xff]  }
 0x6af   : > { %v3538_v15 = vpop.f32.mrf.mxu0 }
 0x6b0   : > { %v3543_v24 = vpack.c.bf16 %v3538_v15, %v3538_v15  ;;  %v5332_v15 = vld [vmem:[%s6537_s11] sm:$0xff]  }
 0x6b1   : > { %v3540_v19 = vpop.f32.mrf.mxu0 }
 0x6b2   : > { %v3544_v21 = vpack.c.bf16 %v3540_v19, %v3540_v19 }
 0x6b4   : > { %4782 = vmatprep.mubr.msk.bf16.mxu0 %vm2826_vm8, %v3544_v21 }
 0x6b5   : > { %3694 = vmatmul.mubr.bf16.vlgmr.msra.gmra.mxu0 %v3543_v24 }
 0x6b6   : > { %4912 = vmatpush3.bf16.msra.mxu0 %v5308_v23  ;;  %4921 = vmatprep.mubr.msk.bf16.mxu0 %vm5392_vm9, %v5390_v1 }
 0x6b7   : > { %4913 = vmatprep.subr.bf16.mxu0 %v5390_v1 }
 0x6ba   : > { %4914 = vmatpush3.bf16.msra.mxu0 %v5310_v25 }
 0x6bb   : > { %4915 = vmatprep.subr.bf16.mxu0 %v5390_v1 }
 0x6be   : > { %4916 = vmatpush3.bf16.msra.mxu0 %v5312_v29 }
 0x6bf   : > { %4917 = vmatprep.subr.bf16.mxu0 %v5390_v1 }
 0x6c2   : > { %4918 = vmatpush3.bf16.msra.mxu0 %v5314_v32 }
 0x6c3   : > { %4919 = vmatprep.subr.bf16.mxu0 %v5390_v1 }
 0x6c6   : > { %4920 = vmatpush3.bf16.msra.mxu0 %v5316_v16  ;;  %v4195_v16 = vld [vmem:[%s6536_s10] sm:$0x1] }
 0x6c7   : > { %4945 = vmatprep.subr.bf16.mxu0 %v5390_v1 }
 0x775   : > { %v3695_v22 = vpop.f32.mrf.mxu0 }
 0x776   : > { %v3701_v31 = vadd.f32 %v3695_v22, %v3466_v48 }
 0x777   : > { %v3697_v33 = vpop.f32.mrf.mxu0 }
 0x778   : > { %v3709_v38 = vadd.f32 %v4783_v26, %v3701_v31 }
 0x779   : > { %v3698_v39 = vpop.f32.mrf.mxu0 }
 0x77a   : > { %vm3710_vm10 = vcmp.ge.f32.partialorder %v3709_v38, 0.0  ;;  %v3711_v40 = vmul.f32 0.01, %v3709_v38 }
 0x77b   : > { %v3699_v41 = vpop.f32.mrf.mxu0 }
 0x77c   : > { %v3712_v42 = vsel %vm3710_vm10, %v3709_v38, %v3711_v40  ;;  %v4203_v40 = vld [vmem:[%s6538_s12] sm:$0x1] }
 0x77d   : > { %v3713_v43 = vpack.c.bf16 %v3712_v42, %v3712_v42 }
 0x77f   : > { %v3900_v44 = vrot.slane %v3713_v43, 1  ;;  %v3738_v45 = vshll.u32 %v3713_v43, 16  ;;  %v3736_v49 = vshrl.u32 %v3713_v43, 16 }
 0x781   : > { %4922 = vmatmul.mubr.msk.bf16.vlgmr.msra.gmra.mxu0 %vm3772_vm11, %v3900_v44  ;;  %v3740_v51 = vrot.slane %v3738_v45, 1  ;;  %v4257_v45 = vld [vmem:[%s6539_s13] sm:$0x1] }
 0x782   : > { %4951 = vmatprep.mubr.msk.bf16.mxu0 %vm5392_vm9, %v5390_v1  ;;  %4946 = vmatpush3.bf16.msra.mxu0 %v5324_v58 }
 0x783   : > { %v3741_v36 = vor.u32 %v3740_v51, %v3736_v49  ;;  %4947 = vmatprep.subr.bf16.mxu0 %v5390_v1 }
 0x785   : > { %4894 = vmatmul.mubr.msk.bf16.vlgmr.msra.gmra.mxu1 %vm3772_vm11, %v3741_v36 }
 0x786   : > { %4898 = vmatpush3.bf16.msra.mxu1 %v5318_v52  ;;  %4907 = vmatprep.mubr.msk.bf16.mxu1 %vm5392_vm9, %v5390_v1 }
 0x787   : > { %4899 = vmatprep.subr.bf16.mxu1 %v5390_v1  ;;  %4948 = vmatpush3.bf16.msra.mxu0 %v5326_v60 }
 0x788   : > { %4949 = vmatprep.subr.bf16.mxu0 %v5390_v1 }
 0x78a   : > { %4900 = vmatpush3.bf16.msra.mxu1 %v5319_v53 }
 0x78b   : > { %4901 = vmatprep.subr.bf16.mxu1 %v5390_v1  ;;  %4950 = vmatpush3.bf16.msra.mxu0 %v5328_v62 }
 0x78e   : > { %4902 = vmatpush3.bf16.msra.mxu1 %v5320_v54  ;;  %v4263_v54 = vld [vmem:[#allocation2] sm:$0x1] }
 0x78f   : > { %4903 = vmatprep.subr.bf16.mxu1 %v5390_v1 }
 0x792   : > { %4904 = vmatpush3.bf16.msra.mxu1 %v5321_v55 }
 0x793   : > { %4905 = vmatprep.subr.bf16.mxu1 %v5390_v1 }
 0x796   : > { %4906 = vmatpush3.bf16.msra.mxu1 %v5322_v56 }
 0x797   : > { %4925 = vmatprep.subr.bf16.mxu1 %v5390_v1 }
 0x799   : > { %4908 = vmatmul.mubr.msk.bf16.vlgmr.msra.gmra.mxu1 %vm3772_vm11, %v3713_v43 }
 0x79a   : > { %4931 = vmatprep.mubr.msk.bf16.mxu1 %vm5392_vm9, %v5390_v1  ;;  %4926 = vmatpush3.bf16.msra.mxu1 %v5323_v57 }
 0x79b   : > { %4927 = vmatprep.subr.bf16.mxu1 %v5390_v1 }
 0x79e   : > { %4928 = vmatpush3.bf16.msra.mxu1 %v5325_v59 }
 0x79f   : > { %4929 = vmatprep.subr.bf16.mxu1 %v5390_v1 }
 0x7a2   : > { %4930 = vmatpush3.bf16.msra.mxu1 %v5327_v61 }
 0x7a3   : > { %4935 = vmatprep.subr.bf16.mxu1 %v5390_v1 }
 0x841   : > { %v3968_v63 = vpop.f32.mrf.mxu0 }
 0x843   : > { %v4923_v46 = vpop.f32.mrf.mxu0 }
 0x845   : > { %v3810_v47 = vpop.f32.mrf.mxu1  ;;  %v3971_v50 = vpop.f32.mrf.mxu0 }
 0x847   : > { %v4895_v0 = vpop.f32.mrf.mxu1  ;;  %v4924_v3 = vpop.f32.mrf.mxu0 }
 0x849   : > { %v3813_v4 = vpop.f32.mrf.mxu1 }
 0x84b   : > { %v4896_v5 = vpop.f32.mrf.mxu1 }
 0x859   : > { %v3882_v6 = vpop.f32.mrf.mxu1 }
 0x85a   : > { %v3883_v7 = vadd.f32 %v3882_v6, %v3810_v47 }
 0x85b   : > { %v4909_v20 = vpop.f32.mrf.mxu1 }
 0x85c   : > { %v3974_v9 = vadd.f32 %v3968_v63, %v3883_v7 }
 0x85d   : > { %v3885_v28 = vpop.f32.mrf.mxu1 }
 0x85e   : > { %v3982_v10 = vadd.f32 %v4822_v8, %v3974_v9 }
 0x85f   : > { %v4910_v11 = vpop.f32.mrf.mxu1 }
 0x860   : > { %vm3983_vm12 = vcmp.ge.f32.partialorder %v3982_v10, 0.0  ;;  %v3984_v37 = vmul.f32 0.01, %v3982_v10 }
 0x862   : > { %v3985_v35 = vsel %vm3983_vm12, %v3982_v10, %v3984_v37 }
 0x863   : > { %v3986_v12 = vpack.c.bf16 %v3985_v35, %v3985_v35 }
 0x865   : > { %v4001_v14 = vshrl.u32 %v3986_v12, 16  ;;  %v4132_v48 = vrot.slane %v3986_v12, 1 }
 0x867   : > { %4932 = vmatmul.mubr.msk.bf16.vlgmr.msra.gmra.mxu1 %vm523_vm0, %v4001_v14  ;;  %4952 = vmatmul.mubr.msk.bf16.vlgmr.msra.gmra.mxu0 %vm523_vm0, %v4132_v48 }
 0x868   : > { %4936 = vmatpush3.bf16.msra.mxu1 %v5329_v13  ;;  %4941 = vmatprep.mubr.msk.bf16.mxu1 %vm5392_vm9, %v5390_v1 }
 0x869   : > { %4937 = vmatprep.subr.bf16.mxu1 %v5390_v1 }
 0x86c   : > { %4938 = vmatpush3.bf16.msra.mxu1 %v5330_v2 }
 0x86d   : > { %4939 = vmatprep.subr.bf16.mxu1 %v5390_v1 }
 0x870   : > { %4940 = vmatpush3.bf16.msra.mxu1 %v5331_v18 }
 0x871   : > { %4955 = vmatprep.subr.bf16.mxu1 %v5390_v1 }
 0x873   : > { %4942 = vmatmul.mubr.msk.bf16.vlgmr.msra.gmra.mxu1 %vm523_vm0, %v3986_v12  ;;  %vm4259_vm0 = vcmask 516096  }
 0x874   : > { %4957 = vmatprep.mubr.msk.bf16.mxu1 %vm5392_vm9, %v5390_v1  ;;  %4956 = vmatpush3.bf16.msra.mxu1 %v5332_v15 }
 0x927   : > { %v4058_v19 = vpop.f32.mrf.mxu1  ;;  %v4188_v21 = vpop.f32.mrf.mxu0 }
 0x929   : > { %v4933_v23 = vpop.f32.mrf.mxu1  ;;  %v4953_v24 = vpop.f32.mrf.mxu0 }
 0x92b   : > { %v4061_v25 = vpop.f32.mrf.mxu1  ;;  %v4191_v27 = vpop.f32.mrf.mxu0 }
 0x92d   : > { %v4934_v29 = vpop.f32.mrf.mxu1  ;;  %v4954_v30 = vpop.f32.mrf.mxu0 }
 0x933   : > { %v4118_v32 = vpop.f32.mrf.mxu1 }
 0x934   : > { %v4119_v34 = vadd.f32 %v4118_v32, %v4058_v19 }
 0x935   : > { %v4943_v1 = vpop.f32.mrf.mxu1 }
 0x936   : > { %v4194_v17 = vadd.f32 %v4188_v21, %v4119_v34 }
 0x937   : > { %v4121_v22 = vpop.f32.mrf.mxu1 }
 0x938   : > { %v4196_v26 = vadd.f32 %v4195_v16, %v4194_v17 }
 0x939   : > { %v4944_v31 = vpop.f32.mrf.mxu1 }
 0x93a   : > { %vm4197_vm13 = vcmp.ge.f32.partialorder %v4196_v26, 0.0  ;;  %v4198_v33 = vmul.f32 0.01, %v4196_v26 }
 0x93c   : > { %v4199_v38 = vsel %vm4197_vm13, %v4196_v26, %v4198_v33 }
 0x93d   : > { %v4200_v39 = vpack.c.bf16 %v4199_v38, %v4199_v38 }
 0x93f   : > { %4958 = vmatmul.mubr.msk.bf16.vlgmr.msra.gmra.mxu1 %vm4210_vm14, %v4200_v39 }
 0x9ff   : > { %v4248_v41 = vpop.f32.mrf.mxu1 }
 0xa00   : > { %v4249_v42 = vadd.f32 %v4248_v41, %v4203_v40 }
 0xa01   : > { %v4959_v43 = vpop.f32.mrf.mxu1 }
 0xa02   : > { %v4255_v44 = vmul.f32 0.01, %v4249_v42  ;;  %vm4254_vm15 = vcmp.ge.f32.partialorder %v4249_v42, 0.0 }
 0xa03   : > { %v4251_v49 = vpop.f32.mrf.mxu1 }
 0xa04   : > { %v4256_v51 = vsel %vm4254_vm15, %v4249_v42, %v4255_v44 }
 0xa05   : > { %v4960_v52 = vpop.f32.mrf.mxu1  ;;  %v4258_v36 = vmul.f32 %v4257_v45, %v4256_v51 }
 0xa07   : > { %v4260_v53 = vsel %vm4259_vm0, %v4258_v36, 0.0 }
 0xa08   : > { %4261 = vadd.xlane.f32.xlu0 %v4260_v53 }
 0xa91   : > { %v4262_v55 = vpop.xlane.xlu0 %4261 }
 0xa92   : > { %v4264_v56 = vadd.f32 %v4263_v54, %v4262_v55 }
 0xa94   : > { %v4265_v57 = vand.u32 2147483647, %v4264_v56  ;;  %vm4269_vm2 = vcmp.ge.f32.partialorder %v4264_v56, 0.0 }
 0xa96   : > { %v4266_v58 = vsub.f32 0.0, %v4265_v57 }
 0xa98   : > { %v4267_v59 = vmul.f32 1.442695, %v4266_v58 }
 0xa9a   : > { %5333 = vpow2.f32 %v4267_v59 }
 0xaa7   : > { %v5334_v60 = vpop.eup %5333 }
 0xaa8   : > { %v4270_v61 = vadd.f32 1.0, %v5334_v60 }
 0xaaa   : > { %5335 = vrcp.f32 %v4270_v61 }
 0xab7   : > { %v5336_v62 = vpop.eup %5335 }
 0xab8   : > { %v4273_v63 = vmul.f32 %v5336_v62, %v5334_v60 }
 0xaba   : > { %v4274_v46 = vsel %vm4269_vm2, %v5336_v62, %v4273_v63 }
 0xabb   : > { %4276 = vst.msk [vmem:[%s507_s16] sm:$0x1] %vm4275_vm1, %v4274_v46 }
 0xabc PF: > { %s28_s20 = sadd.s32 1, %s5385_s20  }
 0xabd   : > { %p25_p1 = scmp.ge.s32.totalorder %s28_s20, 4  }
 0xabf   :  { %27 = sbr.rel (!%p25_p1) target bundleno = 4 (0x4), region = 139 }
 0xac4   :  { %4294 = vsyncpa [#allocation4], 1 }
 0xac5   :  { %4296 = vsyncpa [#allocation4 + $0x1], 1 }

</bundles_post_ra>
